<compile_context>
chip_gen: v6e
topology: v6e:2x2x1
jax: 0.10.0
libtpu: 0.0.40
codegen_flags: <defaults>
</compile_context>

<pallas_src>
import jax
import jax.numpy as jnp
from jax.experimental import pallas as pl
from jax.experimental.pallas import tpu as pltpu

# Layer sizes of GeneNet.
H1, H2, H3, OUT = 1024, 512, 256, 64
OUT_PAD = 128                 # lane-dense output block (sliced back to OUT outside)
BM_MAX = 512                  # max batch tile (MXU M dimension)
TK_MAX = 2048                 # layer-1 contraction (feature) tile when streaming
W1_RESIDENT_BYTES = 16 << 20  # keep whole w1 resident if it fits this (v7x-safe)


def _round_up(x, m):
    return (x + m - 1) // m * m


def _cdiv(a, b):
    return -(-a // b)


# ---------------------------------------------------------------------------
# Kernel
# ---------------------------------------------------------------------------
def _genenet_kernel(x_ref,
                    w1_ref, b1_ref,
                    w2_ref, b2_ref,
                    w3_ref, b3_ref,
                    w4_ref, b4_ref,
                    o_ref, acc_ref):
    """One (batch-tile, K-tile) grid step of the 4-layer MLP.

    Layer 1 is accumulated over the K (feature) grid axis in an f32 VMEM
    scratch (seeded with the bias); layers 2-4 run once, on the last K step,
    entirely from VMEM.
    """
    k = pl.program_id(1)

    @pl.when(k == 0)
    def _():
        # Seed the accumulator with the broadcast bias: saves a zeros fill and
        # the tail bias add.
        acc_ref[...] = jnp.broadcast_to(b1_ref[...], acc_ref.shape)

    acc_ref[...] += jnp.dot(x_ref[...], w1_ref[...],
                            preferred_element_type=jnp.float32)

    @pl.when(k == pl.num_programs(1) - 1)
    def _():
        # ReLU (+ eval-mode dropout == identity). Bias adds / ReLU in f32,
        # matmul inputs bf16 with f32 MXU accumulation.
        h = jnp.maximum(acc_ref[...], 0.0).astype(jnp.bfloat16)

        h = jnp.dot(h, w2_ref[...], preferred_element_type=jnp.float32) + b2_ref[...]
        h = jnp.maximum(h, 0.0).astype(jnp.bfloat16)

        h = jnp.dot(h, w3_ref[...], preferred_element_type=jnp.float32) + b3_ref[...]
        h = jnp.maximum(h, 0.0).astype(jnp.bfloat16)

        y = jnp.dot(h, w4_ref[...], preferred_element_type=jnp.float32) + b4_ref[...]
        o_ref[...] = y.astype(o_ref.dtype)


# ---------------------------------------------------------------------------
# Spec helpers / sizing heuristics
# ---------------------------------------------------------------------------
def _spec(shape, index_map, depth=None):
    """BlockSpec with an optional explicit buffer depth (graceful fallback)."""
    if depth is None:
        return pl.BlockSpec(shape, index_map)
    try:
        return pl.BlockSpec(shape, index_map, pipeline_mode=pl.Buffered(depth))
    except TypeError:  # older jax without BlockSpec.pipeline_mode support
        return pl.BlockSpec(shape, index_map)


def _resident_spec(shape):
    """Grid-invariant weight/bias block: keep resident, single-buffered."""
    return _spec(shape, lambda i, k: (0, 0), depth=1)


def _choose_bm(batch):
    """Single batch tile whenever batch <= BM_MAX (w1 streamed exactly once);
    only split above BM_MAX."""
    if batch <= BM_MAX:
        return _round_up(batch, 8)
    return BM_MAX


def _choose_tk(f_padded):
    """Whole-w1-resident when it fits the budget; otherwise stream K tiles."""
    if f_padded * H1 * 2 <= W1_RESIDENT_BYTES:
        return f_padded
    return TK_MAX


def _vmem_limit_bytes(bm, tk, nk):
    w1_bufs = (1 if nk == 1 else 3) * tk * H1 * 2                 # bf16
    x_bufs = (2 if nk == 1 else 3) * bm * tk * 2                  # bf16
    resident = (H1 * H2 + H2 * H3 + H3 * OUT_PAD) * 2             # bf16, single-buffered
    biases = (H1 + H2 + H3 + OUT_PAD) * 4
    out_bufs = 2 * bm * OUT_PAD * 4
    acc = bm * H1 * 4                                             # f32 scratch accumulator
    act = bm * (H1 + H2 + H3) * (4 + 2)                           # f32 + bf16 temporaries
    est = w1_bufs + x_bufs + resident + biases + out_bufs + acc + act
    # ~1.5x headroom, no artificial 32 MiB floor (matters on v7x's 64 MiB VMEM).
    return int(min(max(est + est // 2, 8 << 20), 48 << 20))


# ---------------------------------------------------------------------------
# Param preparation (ONE-TIME) and forward wrapper
# ---------------------------------------------------------------------------
def prepare_params(params):
    """One-time bf16 cast + padding of GeneNet weights.

    Do this at param-load time, NOT per forward call: for realistic mRNA
    feature counts w1 is tens of MB, and re-casting/padding it every call
    roughly triples the weight HBM traffic of the kernel itself.
    """
    F = params["w1"].shape[0]
    Fp = _round_up(F, 128)
    tk = _choose_tk(Fp)
    Fp = _round_up(Fp, tk)
    return {
        "w1": jnp.pad(params["w1"].astype(jnp.bfloat16), ((0, Fp - F), (0, 0))),
        "b1": params["b1"].astype(jnp.float32),
        "w2": params["w2"].astype(jnp.bfloat16),
        "b2": params["b2"].astype(jnp.float32),
        "w3": params["w3"].astype(jnp.bfloat16),
        "b3": params["b3"].astype(jnp.float32),
        "w4": jnp.pad(params["w4"].astype(jnp.bfloat16), ((0, 0), (0, OUT_PAD - OUT))),
        "b4": jnp.pad(params["b4"].astype(jnp.float32), ((0, 0), (0, OUT_PAD - OUT))),
    }


@jax.jit
def genenet_forward(x, prepared):
    """x: [B, F] float. prepared: output of prepare_params()."""
    B, F = x.shape
    Fp = prepared["w1"].shape[0]
    assert F <= Fp, (F, Fp)

    tk = _choose_tk(Fp)            # consistent with prepare_params by construction
    nk = Fp // tk
    bm = _choose_bm(B)
    Bp = _round_up(B, bm)
    nbm = Bp // bm

    # Only the (small, data-dependent) activations are cast/padded per call.
    xb = jnp.pad(x.astype(jnp.bfloat16), ((0, Bp - B), (0, Fp - F)))

    if nk == 1:
        # w1 fully resident in VMEM; x uses default 2-deep double buffering.
        x_spec = pl.BlockSpec((bm, tk), lambda i, k: (i, 0))
        w1_spec = _resident_spec((tk, H1))
    else:
        # Streamed K tiles: 3-deep pipeline hides the layer-2..4 tail that runs
        # only on the last K step of each batch tile.
        x_spec = _spec((bm, tk), lambda i, k: (i, k), depth=3)
        w1_spec = _spec((tk, H1), lambda i, k: (k, 0), depth=3)

    cost = pl.CostEstimate(
        flops=2 * Bp * (Fp * H1 + H1 * H2 + H2 * H3 + H3 * OUT_PAD),
        transcendentals=0,
        bytes_accessed=(Bp * Fp * 2
                        + (nbm if nk > 1 else 1) * Fp * H1 * 2
                        + (H1 * H2 + H2 * H3 + H3 * OUT_PAD) * 2
                        + (H1 + H2 + H3 + OUT_PAD) * 4
                        + Bp * OUT_PAD * 4),
    )

    out = pl.pallas_call(
        _genenet_kernel,
        out_shape=jax.ShapeDtypeStruct((Bp, OUT_PAD), jnp.float32),
        grid=(nbm, nk),
        in_specs=[
            x_spec,                                                   # x tile
            w1_spec,                                                  # w1 (resident or K-streamed)
            _resident_spec((1, H1)),                                  # b1
            _resident_spec((H1, H2)), _resident_spec((1, H2)),        # layer 2
            _resident_spec((H2, H3)), _resident_spec((1, H3)),        # layer 3
            _resident_spec((H3, OUT_PAD)), _resident_spec((1, OUT_PAD)),  # layer 4
        ],
        out_specs=pl.BlockSpec((bm, OUT_PAD), lambda i, k: (i, 0)),
        scratch_shapes=[pltpu.VMEM((bm, H1), jnp.float32)],
        compiler_params=pltpu.CompilerParams(
            dimension_semantics=("parallel", "arbitrary"),
            vmem_limit_bytes=_vmem_limit_bytes(bm, tk, nk),
        ),
        cost_estimate=cost,
    )(xb, prepared["w1"], prepared["b1"], prepared["w2"], prepared["b2"],
      prepared["w3"], prepared["b3"], prepared["w4"], prepared["b4"])

    return out[:B, :OUT]


# ---------------------------------------------------------------------------
# Init / reference / test
# ---------------------------------------------------------------------------
def init_params(key, input_size):
    """Deterministic init mimicking nn.Linear's U(-1/sqrt(fan_in), +1/sqrt(fan_in))."""
    dims = [(input_size, H1), (H1, H2), (H2, H3), (H3, OUT)]
    params = {}
    for idx, (fan_in, fan_out) in enumerate(dims, start=1):
        key, kw, kb = jax.random.split(key, 3)
        bound = 1.0 / jnp.sqrt(fan_in)
        params[f"w{idx}"] = jax.random.uniform(
            kw, (fan_in, fan_out), jnp.float32, -bound, bound)
        params[f"b{idx}"] = jax.random.uniform(
            kb, (1, fan_out), jnp.float32, -bound, bound)
    return params


def genenet_reference(x, params):
    """Pure-JAX reference with the kernel's numerics (bf16 matmul in, f32 accum)."""
    def layer(h, w, b):
        return jnp.dot(h.astype(jnp.bfloat16), w.astype(jnp.bfloat16),
                       preferred_element_type=jnp.float32) + b.astype(jnp.float32)
    h = jnp.maximum(layer(x, params["w1"], params["b1"]), 0.0)
    h = jnp.maximum(layer(h, params["w2"], params["b2"]), 0.0)
    h = jnp.maximum(layer(h, params["w3"], params["b3"]), 0.0)
    return layer(h, params["w4"], params["b4"])


if __name__ == "__main__":
    key = jax.random.PRNGKey(0)
    kx, kp = jax.random.split(key)

    # Case 1: tiny batch, non-128-aligned feature count.
    batch, input_size = 2, 200
    x = jax.random.normal(kx, (batch, input_size), jnp.float32)
    params = init_params(kp, input_size)
    prepared = prepare_params(params)            # one-time bf16 cast + padding
    y = jax.block_until_ready(genenet_forward(x, prepared))
    y_ref = genenet_reference(x, params)
    assert y.shape == (batch, OUT), y.shape
    assert jnp.allclose(y, y_ref, atol=1e-2, rtol=1e-2), (
        float(jnp.max(jnp.abs(y - y_ref))))

    # Case 2: non-aligned batch and features (exercises batch/feature padding).
    batch2, input2 = 9, 333
    x2 = jax.random.normal(kx, (batch2, input2), jnp.float32)
    params2 = init_params(kp, input2)
    prepared2 = prepare_params(params2)
    y2 = jax.block_until_ready(genenet_forward(x2, prepared2))
    y2_ref = genenet_reference(x2, params2)
    assert y2.shape == (batch2, OUT), y2.shape
    assert jnp.allclose(y2, y2_ref, atol=1e-2, rtol=1e-2), (
        float(jnp.max(jnp.abs(y2 - y2_ref))))

    print("KERNEL_OK")
</pallas_src>

<mosaic_0001>
module attributes {stable_mosaic.version = 11 : i64} {
  func.func @_genenet_kernel(%arg0: i32, %arg1: i32, %arg2: memref<8x256xbf16, #tpu.memory_space<vmem>>, %arg3: memref<256x1024xbf16, #tpu.memory_space<vmem>>, %arg4: memref<1x1024xf32, #tpu.memory_space<vmem>>, %arg5: memref<1024x512xbf16, #tpu.memory_space<vmem>>, %arg6: memref<1x512xf32, #tpu.memory_space<vmem>>, %arg7: memref<512x256xbf16, #tpu.memory_space<vmem>>, %arg8: memref<1x256xf32, #tpu.memory_space<vmem>>, %arg9: memref<256x128xbf16, #tpu.memory_space<vmem>>, %arg10: memref<1x128xf32, #tpu.memory_space<vmem>>, %arg11: memref<8x128xf32, #tpu.memory_space<vmem>>, %arg12: memref<8x1024xf32, #tpu.memory_space<vmem>>) attributes {dimension_semantics = [#tpu.dimension_semantics<parallel>, #tpu.dimension_semantics<arbitrary>], iteration_bounds = array<i64: 1, 1>, scalar_prefetch = 0 : i64, scratch_operands = 1 : i64, tpu.core_type = #tpu.core_type<tc>, window_params = [{transform_indices = @transform_0, window_bounds = array<i64: 8, 256>}, {pipeline_mode = #tpu.pipeline_mode<synchronous>, transform_indices = @transform_1, window_bounds = array<i64: 256, 1024>}, {pipeline_mode = #tpu.pipeline_mode<synchronous>, transform_indices = @transform_2, window_bounds = array<i64: 1, 1024>}, {pipeline_mode = #tpu.pipeline_mode<synchronous>, transform_indices = @transform_3, window_bounds = array<i64: 1024, 512>}, {pipeline_mode = #tpu.pipeline_mode<synchronous>, transform_indices = @transform_4, window_bounds = array<i64: 1, 512>}, {pipeline_mode = #tpu.pipeline_mode<synchronous>, transform_indices = @transform_5, window_bounds = array<i64: 512, 256>}, {pipeline_mode = #tpu.pipeline_mode<synchronous>, transform_indices = @transform_6, window_bounds = array<i64: 1, 256>}, {pipeline_mode = #tpu.pipeline_mode<synchronous>, transform_indices = @transform_7, window_bounds = array<i64: 256, 128>}, {pipeline_mode = #tpu.pipeline_mode<synchronous>, transform_indices = @transform_8, window_bounds = array<i64: 1, 128>}, {transform_indices = @transform_9, window_bounds = array<i64: 8, 128>}]} {
    %c0_i32 = arith.constant 0 : i32
    %0 = arith.cmpi eq, %arg1, %c0_i32 : i32
    %1 = arith.extui %0 : i1 to i32
    %c0_i32_0 = arith.constant 0 : i32
    %2 = arith.cmpi ne, %1, %c0_i32_0 : i32
    scf.if %2 {
      %c0_10 = arith.constant 0 : index
      %c0_11 = arith.constant 0 : index
      %12 = vector.load %arg4[%c0_10, %c0_11] : memref<1x1024xf32, #tpu.memory_space<vmem>>, vector<1x1024xf32>
      %13 = vector.shape_cast %12 : vector<1x1024xf32> to vector<1x1024xf32>
      %14 = vector.broadcast %13 : vector<1x1024xf32> to vector<8x1024xf32>
      %c0_12 = arith.constant 0 : index
      %c0_13 = arith.constant 0 : index
      %15 = vector.load %arg12[%c0_12, %c0_13] : memref<8x1024xf32, #tpu.memory_space<vmem>>, vector<8x1024xf32>
      tpu.vector_store %arg12[%c0_12, %c0_13], %14 {strides = array<i32>} : memref<8x1024xf32, #tpu.memory_space<vmem>>, vector<8x1024xf32>,
    } else {
    }
    %c0 = arith.constant 0 : index
    %c0_1 = arith.constant 0 : index
    %3 = vector.load %arg12[%c0, %c0_1] : memref<8x1024xf32, #tpu.memory_space<vmem>>, vector<8x1024xf32>
    %c0_2 = arith.constant 0 : index
    %c0_3 = arith.constant 0 : index
    %4 = vector.load %arg2[%c0_2, %c0_3] : memref<8x256xbf16, #tpu.memory_space<vmem>>, vector<8x256xbf16>
    %c0_4 = arith.constant 0 : index
    %c0_5 = arith.constant 0 : index
    %5 = vector.load %arg3[%c0_4, %c0_5] : memref<256x1024xbf16, #tpu.memory_space<vmem>>, vector<256x1024xbf16>
    %cst = arith.constant dense<0.000000e+00> : vector<8x1024xf32>
    %6 = tpu.matmul %4, %5, %cst {dimension_numbers = #tpu.dot_dimension_numbers<[1], [0], [0], [1], [0, 0, 1, 1], [], []>} : vector<8x256xbf16>, vector<256x1024xbf16>, vector<8x1024xf32> -> vector<8x1024xf32>
    %7 = arith.addf %3, %6 : vector<8x1024xf32>
    %c0_6 = arith.constant 0 : index
    %c0_7 = arith.constant 0 : index
    %8 = vector.load %arg12[%c0_6, %c0_7] : memref<8x1024xf32, #tpu.memory_space<vmem>>, vector<8x1024xf32>
    tpu.vector_store %arg12[%c0_6, %c0_7], %7 {strides = array<i32>} : memref<8x1024xf32, #tpu.memory_space<vmem>>, vector<8x1024xf32>,
    %c0_i32_8 = arith.constant 0 : i32
    %9 = arith.cmpi eq, %arg1, %c0_i32_8 : i32
    %10 = arith.extui %9 : i1 to i32
    %c0_i32_9 = arith.constant 0 : i32
    %11 = arith.cmpi ne, %10, %c0_i32_9 : i32
    scf.if %11 {
      %c0_10 = arith.constant 0 : index
      %c0_11 = arith.constant 0 : index
      %12 = vector.load %arg12[%c0_10, %c0_11] : memref<8x1024xf32, #tpu.memory_space<vmem>>, vector<8x1024xf32>
      %cst_12 = arith.constant 0.000000e+00 : f32
      %13 = vector.broadcast %cst_12 : f32 to vector<8x1024xf32>
      %14 = arith.maximumf %12, %13 : vector<8x1024xf32>
      %15 = arith.truncf %14 : vector<8x1024xf32> to vector<8x1024xbf16>
      %c0_13 = arith.constant 0 : index
      %c0_14 = arith.constant 0 : index
      %16 = vector.load %arg5[%c0_13, %c0_14] : memref<1024x512xbf16, #tpu.memory_space<vmem>>, vector<1024x512xbf16>
      %cst_15 = arith.constant dense<0.000000e+00> : vector<8x512xf32>
      %17 = tpu.matmul %15, %16, %cst_15 {dimension_numbers = #tpu.dot_dimension_numbers<[1], [0], [0], [1], [0, 0, 1, 1], [], []>} : vector<8x1024xbf16>, vector<1024x512xbf16>, vector<8x512xf32> -> vector<8x512xf32>
      %c0_16 = arith.constant 0 : index
      %c0_17 = arith.constant 0 : index
      %18 = vector.load %arg6[%c0_16, %c0_17] : memref<1x512xf32, #tpu.memory_space<vmem>>, vector<1x512xf32>
      %19 = vector.broadcast %18 : vector<1x512xf32> to vector<8x512xf32>
      %20 = arith.addf %17, %19 : vector<8x512xf32>
      %cst_18 = arith.constant 0.000000e+00 : f32
      %21 = vector.broadcast %cst_18 : f32 to vector<8x512xf32>
      %22 = arith.maximumf %20, %21 : vector<8x512xf32>
      %23 = arith.truncf %22 : vector<8x512xf32> to vector<8x512xbf16>
      %c0_19 = arith.constant 0 : index
      %c0_20 = arith.constant 0 : index
      %24 = vector.load %arg7[%c0_19, %c0_20] : memref<512x256xbf16, #tpu.memory_space<vmem>>, vector<512x256xbf16>
      %cst_21 = arith.constant dense<0.000000e+00> : vector<8x256xf32>
      %25 = tpu.matmul %23, %24, %cst_21 {dimension_numbers = #tpu.dot_dimension_numbers<[1], [0], [0], [1], [0, 0, 1, 1], [], []>} : vector<8x512xbf16>, vector<512x256xbf16>, vector<8x256xf32> -> vector<8x256xf32>
      %c0_22 = arith.constant 0 : index
      %c0_23 = arith.constant 0 : index
      %26 = vector.load %arg8[%c0_22, %c0_23] : memref<1x256xf32, #tpu.memory_space<vmem>>, vector<1x256xf32>
      %27 = vector.broadcast %26 : vector<1x256xf32> to vector<8x256xf32>
      %28 = arith.addf %25, %27 : vector<8x256xf32>
      %cst_24 = arith.constant 0.000000e+00 : f32
      %29 = vector.broadcast %cst_24 : f32 to vector<8x256xf32>
      %30 = arith.maximumf %28, %29 : vector<8x256xf32>
      %31 = arith.truncf %30 : vector<8x256xf32> to vector<8x256xbf16>
      %c0_25 = arith.constant 0 : index
      %c0_26 = arith.constant 0 : index
      %32 = vector.load %arg9[%c0_25, %c0_26] : memref<256x128xbf16, #tpu.memory_space<vmem>>, vector<256x128xbf16>
      %cst_27 = arith.constant dense<0.000000e+00> : vector<8x128xf32>
      %33 = tpu.matmul %31, %32, %cst_27 {dimension_numbers = #tpu.dot_dimension_numbers<[1], [0], [0], [1], [0, 0, 1, 1], [], []>} : vector<8x256xbf16>, vector<256x128xbf16>, vector<8x128xf32> -> vector<8x128xf32>
      %c0_28 = arith.constant 0 : index
      %c0_29 = arith.constant 0 : index
      %34 = vector.load %arg10[%c0_28, %c0_29] : memref<1x128xf32, #tpu.memory_space<vmem>>, vector<1x128xf32>
      %35 = vector.broadcast %34 : vector<1x128xf32> to vector<8x128xf32>
      %36 = arith.addf %33, %35 : vector<8x128xf32>
      %c0_30 = arith.constant 0 : index
      %c0_31 = arith.constant 0 : index
      %37 = vector.load %arg11[%c0_30, %c0_31] : memref<8x128xf32, #tpu.memory_space<vmem>>, vector<8x128xf32>
      tpu.vector_store %arg11[%c0_30, %c0_31], %36 {strides = array<i32>} : memref<8x128xf32, #tpu.memory_space<vmem>>, vector<8x128xf32>,
    } else {
    }
    return
  }
  func.func @transform_0(%arg0: i32, %arg1: i32) -> (i32, i32) {
    %c0_i32 = arith.constant 0 : i32
    %c0_i32_0 = arith.constant 0 : i32
    return %arg0, %c0_i32 : i32, i32
  }
  func.func @transform_1(%arg0: i32, %arg1: i32) -> (i32, i32) {
    %c0_i32 = arith.constant 0 : i32
    %c0_i32_0 = arith.constant 0 : i32
    %c0_i32_1 = arith.constant 0 : i32
    return %c0_i32, %c0_i32_0 : i32, i32
  }
  func.func @transform_2(%arg0: i32, %arg1: i32) -> (i32, i32) {
    %c0_i32 = arith.constant 0 : i32
    %c0_i32_0 = arith.constant 0 : i32
    %c0_i32_1 = arith.constant 0 : i32
    return %c0_i32, %c0_i32_0 : i32, i32
  }
  func.func @transform_3(%arg0: i32, %arg1: i32) -> (i32, i32) {
    %c0_i32 = arith.constant 0 : i32
    %c0_i32_0 = arith.constant 0 : i32
    %c0_i32_1 = arith.constant 0 : i32
    return %c0_i32, %c0_i32_0 : i32, i32
  }
  func.func @transform_4(%arg0: i32, %arg1: i32) -> (i32, i32) {
    %c0_i32 = arith.constant 0 : i32
    %c0_i32_0 = arith.constant 0 : i32
    %c0_i32_1 = arith.constant 0 : i32
    return %c0_i32, %c0_i32_0 : i32, i32
  }
  func.func @transform_5(%arg0: i32, %arg1: i32) -> (i32, i32) {
    %c0_i32 = arith.constant 0 : i32
    %c0_i32_0 = arith.constant 0 : i32
    %c0_i32_1 = arith.constant 0 : i32
    return %c0_i32, %c0_i32_0 : i32, i32
  }
  func.func @transform_6(%arg0: i32, %arg1: i32) -> (i32, i32) {
    %c0_i32 = arith.constant 0 : i32
    %c0_i32_0 = arith.constant 0 : i32
    %c0_i32_1 = arith.constant 0 : i32
    return %c0_i32, %c0_i32_0 : i32, i32
  }
  func.func @transform_7(%arg0: i32, %arg1: i32) -> (i32, i32) {
    %c0_i32 = arith.constant 0 : i32
    %c0_i32_0 = arith.constant 0 : i32
    %c0_i32_1 = arith.constant 0 : i32
    return %c0_i32, %c0_i32_0 : i32, i32
  }
  func.func @transform_8(%arg0: i32, %arg1: i32) -> (i32, i32) {
    %c0_i32 = arith.constant 0 : i32
    %c0_i32_0 = arith.constant 0 : i32
    %c0_i32_1 = arith.constant 0 : i32
    return %c0_i32, %c0_i32_0 : i32, i32
  }
  func.func @transform_9(%arg0: i32, %arg1: i32) -> (i32, i32) {
    %c0_i32 = arith.constant 0 : i32
    %c0_i32_0 = arith.constant 0 : i32
    return %arg0, %c0_i32 : i32, i32
  }
}

</mosaic_0001>

<bundles_post_ra>
// kernel: genenet_forward.1
= control target key start
LH: loop header
LB: loop body
LE: loop exit
PB: predicated region body
PF: predicated region fallthrough
CT: control target
= control target key end

     0   :  { %14 = vsyncpa [#allocation4], 0  ;;  %s4975_s0 = inlined_call_operand.vmem [shape: bf16[8,256], index: 0, kind: input, shape index: {}]   ;;  %s4976_s1 = inlined_call_operand.hbm [shape: bf16[256,1024], index: 1, kind: input, shape index: {}]   ;;  %s4977_s2 = inlined_call_operand.vmem [shape: f32[1,1024], index: 2, kind: input, shape index: {}]   ;;  %s4978_s3 = inlined_call_operand.hbm [shape: bf16[1024,512], index: 3, kind: input, shape index: {}]   ;;  %s4979_s4 = inlined_call_operand.vmem [shape: f32[1,512], index: 4, kind: input, shape index: {}]   ;;  %s4980_s5 = inlined_call_operand.hbm [shape: bf16[512,256], index: 5, kind: input, shape index: {}]   ;;  %s4981_s6 = inlined_call_operand.vmem [shape: f32[1,256], index: 6, kind: input, shape index: {}]   ;;  %s4982_s7 = inlined_call_operand.hbm [shape: bf16[256,128], index: 7, kind: input, shape index: {}]   ;;  %s4983_s8 = inlined_call_operand.vmem [shape: f32[1,128], index: 8, kind: input, shape index: {}]   ;;  %s4984_s9 = inlined_call_operand.vmem [shape: f32[8,128], index: 9, kind: output, shape index: {}]  }
   0x1   :  { %15 = vsyncpa [#allocation6], 0 }
   0x2   :  { %16 = vsyncpa [#allocation9], 0  ;;  %s4777_s30 = smov [#allocation5]  }
   0x3   :  { %s38_s10 = sshll.u32 %s4777_s30, 4  ;;  %s39_s10 = int_to_ptr.vmem [resolvable:$true] %s38_s10 }
   0x4   :  { %s4699_s11 = scalar_lea.vmem %s39_s10, 32768  ;;  %p4704_p1 = scmp.lt.s32.totalorder %s39_s10, %s39_s10 }
   0x5   :  { %p4700_p0 = scmp.ne.s32.totalorder %s39_s10, %s4699_s11  ;;  %p4705_p2 = scmp.lt.s32.totalorder %s4699_s11, %s4699_s11 }
   0x7   :  { %p4706_p3 = por %p4705_p2, %p4704_p1 }
   0x9   :  { %p4707_p4 = pnand %p4706_p3, %p4700_p0 }
   0xb   :  { %4710 = shalt.err (!%p4707_p4)
}
   0xc   :  { %s4778_s12 = smov 256   ;;  %s4779_s13 = smov 16  }
   0xd   :  { %44 = dma.hbm_to_vmem [thread:$0]  %s4978_s3, 32768, %s39_s10, [#allocation6], %s4778_s12, %s4778_s12, %s4779_s13  }
   0xe   :  { %s4780_s16 = smov [#allocation3]  }
   0xf   :  { %s24_s17 = sshll.u32 %s4780_s16, 4  ;;  %s25_s17 = int_to_ptr.vmem [resolvable:$true] %s24_s17 }
  0x10   :  { %s4719_s18 = scalar_lea.vmem %s25_s17, 16384  ;;  %p4724_p6 = scmp.lt.s32.totalorder %s25_s17, %s25_s17 }
  0x11   :  { %p4720_p5 = scmp.ne.s32.totalorder %s25_s17, %s4719_s18  ;;  %p4725_p7 = scmp.lt.s32.totalorder %s4719_s18, %s4719_s18 }
  0x13   :  { %p4726_p8 = por %p4725_p7, %p4724_p6 }
  0x15   :  { %p4727_p9 = pnand %p4726_p8, %p4720_p5 }
  0x17   :  { %4730 = shalt.err (!%p4727_p9)
}
  0x18   :  { %s4781_s19 = smov 512   ;;  %s4782_s20 = smov 32  }
  0x19   :  { %30 = dma.hbm_to_vmem [thread:$0]  %s4976_s1, 16384, %s25_s17, [#allocation4], %s4781_s19, %s4781_s19, %s4782_s20  }
  0x1a   :  { %s4783_s23 = smov [#allocation7]  }
  0x1b   :  { %s52_s24 = sshll.u32 %s4783_s23, 4  ;;  %s53_s24 = int_to_ptr.vmem [resolvable:$true] %s52_s24 }
  0x1c   :  { %s4739_s3 = scalar_lea.vmem %s53_s24, 8192  ;;  %p4744_p11 = scmp.lt.s32.totalorder %s53_s24, %s53_s24 }
  0x1d   :  { %p4740_p10 = scmp.ne.s32.totalorder %s53_s24, %s4739_s3  ;;  %p4745_p12 = scmp.lt.s32.totalorder %s4739_s3, %s4739_s3 }
  0x1f   :  { %p4746_p13 = por %p4745_p12, %p4744_p11 }
  0x21   :  { %p4747_p0 = pnand %p4746_p13, %p4740_p10 }
  0x23   :  { %4750 = shalt.err (!%p4747_p0)
}
  0x24   :  { %s4784_s25 = smov 128   ;;  %s4785_s26 = smov 8  }
  0x25   :  { %58 = dma.hbm_to_vmem [thread:$0]  %s4980_s5, 8192, %s53_s24, [#allocation6], %s4784_s25, %s4784_s25, %s4785_s26  }
  0x26   :  { %s4786_s29 = smov [#allocation8]  }
  0x27   :  { %s66_s30 = sshll.u32 %s4786_s29, 4  ;;  %s67_s30 = int_to_ptr.vmem [resolvable:$true] %s66_s30 }
  0x28   :  { %s4759_s1 = scalar_lea.vmem %s67_s30, 2048  ;;  %p4764_p2 = scmp.lt.s32.totalorder %s67_s30, %s67_s30 }
  0x29   :  { %p4760_p1 = scmp.ne.s32.totalorder %s67_s30, %s4759_s1  ;;  %p4765_p3 = scmp.lt.s32.totalorder %s4759_s1, %s4759_s1 }
  0x2b   :  { %p4766_p4 = por %p4765_p3, %p4764_p2 }
  0x2d   :  { %p4767_p5 = pnand %p4766_p4, %p4760_p1 }
  0x2f   :  { %4770 = shalt.err (!%p4767_p5)
}
  0x30   :  { %s4787_s10 = smov 64   ;;  %s4788_s11 = smov 4  }
  0x31   :  { %72 = dma.hbm_to_vmem [thread:$0]  %s4982_s7, 2048, %s67_s30, [#allocation9], %s4787_s10, %s4787_s10, %s4788_s11  }
  0x32   :  { %4771 = dma.done.wait [#allocation4], 16384  }
  0x33   :  { %4772 = vsyncadd [#allocation4], 4294950912 }
  0x34   :  { %4773 = dma.done.wait [#allocation6], 40960  }
  0x35   :  { %4774 = vsyncadd [#allocation6], 4294926336 }
  0x36   :  { %4775 = dma.done.wait [#allocation9], 2048  }
  0x37   :  { %4776 = vsyncadd [#allocation9], 4294965248  ;;  %v207_v0 = vld [vmem:[#allocation3 + $0x1c0] sm:$0xff]  ;;  %v208_v2 = vld [vmem:[#allocation3 + $0x1c8] sm:$0xff] }
  0x38   :  { %v211_v1 = vld [vmem:[#allocation3 + $0x1e0] sm:$0xff]  ;;  %v212_v4 = vld [vmem:[#allocation3 + $0x1e8] sm:$0xff] }
  0x39   :  { %v3751_v3 = vcombine.high %v207_v0, %v211_v1  ;;  %v3750_v5 = vcombine.low %v207_v0, %v211_v1  ;;  %v199_v6 = vld [vmem:[#allocation3 + $0x180] sm:$0xff]  ;;  %v3753_v8 = vcombine.high %v208_v2, %v212_v4  ;;  %v3752_v9 = vcombine.low %v208_v2, %v212_v4  ;;  %v200_v11 = vld [vmem:[#allocation3 + $0x188] sm:$0xff] }
  0x3a   :  { %v203_v7 = vld [vmem:[#allocation3 + $0x1a0] sm:$0xff]  ;;  %v204_v12 = vld [vmem:[#allocation3 + $0x1a8] sm:$0xff] }
  0x3b   :  { %v3743_v10 = vcombine.high %v199_v6, %v203_v7  ;;  %v191_v13 = vld [vmem:[#allocation3 + $0x140] sm:$0xff]  ;;  %926 = vmatprep.subr.bf16.mxu0 %v3751_v3  ;;  %v3745_v14 = vcombine.high %v200_v11, %v204_v12  ;;  %v192_v16 = vld [vmem:[#allocation3 + $0x148] sm:$0xff]  ;;  %967 = vmatprep.subr.bf16.mxu1 %v3753_v8  ;;  %v3742_v18 = vcombine.low %v199_v6, %v203_v7 }
  0x3c   :  { %v195_v15 = vld [vmem:[#allocation3 + $0x160] sm:$0xff]  ;;  %v196_v17 = vld [vmem:[#allocation3 + $0x168] sm:$0xff]  ;;  %927 = vmatpush1.bf16.msra.mxu0 %v3750_v5  ;;  %968 = vmatpush1.bf16.msra.mxu1 %v3752_v9  ;;  %v3744_v19 = vcombine.low %v200_v11, %v204_v12 }
  0x3d   :  { %928 = vmatprep.subr.bf16.mxu0 %v3743_v10  ;;  %v3735_v20 = vcombine.high %v191_v13, %v195_v15  ;;  %969 = vmatprep.subr.bf16.mxu1 %v3745_v14  ;;  %v3737_v21 = vcombine.high %v192_v16, %v196_v17  ;;  %v183_v22 = vld [vmem:[#allocation3 + $0x100] sm:$0xff]  ;;  %v184_v24 = vld [vmem:[#allocation3 + $0x108] sm:$0xff]  ;;  %v3734_v26 = vcombine.low %v191_v13, %v195_v15 }
  0x3e   :  { %v187_v23 = vld [vmem:[#allocation3 + $0x120] sm:$0xff]  ;;  %v188_v25 = vld [vmem:[#allocation3 + $0x128] sm:$0xff]  ;;  %v3736_v27 = vcombine.low %v192_v16, %v196_v17 }
  0x3f   :  { %v3727_v28 = vcombine.high %v183_v22, %v187_v23  ;;  %v3729_v29 = vcombine.high %v184_v24, %v188_v25  ;;  %v175_v30 = vld [vmem:[#allocation3 + $0xc0] sm:$0xff]  ;;  %v176_v32 = vld [vmem:[#allocation3 + $0xc8] sm:$0xff]  ;;  %v3726_v34 = vcombine.low %v183_v22, %v187_v23  ;;  %v3728_v35 = vcombine.low %v184_v24, %v188_v25 }
  0x40   :  { %929 = vmatpush1.bf16.msra.mxu0 %v3742_v18  ;;  %970 = vmatpush1.bf16.msra.mxu1 %v3744_v19  ;;  %v179_v31 = vld [vmem:[#allocation3 + $0xe0] sm:$0xff]  ;;  %v180_v33 = vld [vmem:[#allocation3 + $0xe8] sm:$0xff] }
  0x41   :  { %930 = vmatprep.subr.bf16.mxu0 %v3735_v20  ;;  %971 = vmatprep.subr.bf16.mxu1 %v3737_v21  ;;  %v3719_v36 = vcombine.high %v175_v30, %v179_v31  ;;  %v3721_v37 = vcombine.high %v176_v32, %v180_v33  ;;  %v167_v38 = vld [vmem:[#allocation3 + $0x80] sm:$0xff]  ;;  %v168_v40 = vld [vmem:[#allocation3 + $0x88] sm:$0xff]  ;;  %v3718_v42 = vcombine.low %v175_v30, %v179_v31 }
  0x42   :  { %v171_v39 = vld [vmem:[#allocation3 + $0xa0] sm:$0xff]  ;;  %v172_v41 = vld [vmem:[#allocation3 + $0xa8] sm:$0xff]  ;;  %v3720_v43 = vcombine.low %v176_v32, %v180_v33 }
  0x43   :  { %v3711_v44 = vcombine.high %v167_v38, %v171_v39  ;;  %v3713_v45 = vcombine.high %v168_v40, %v172_v41  ;;  %v159_v46 = vld [vmem:[#allocation3 + $0x40] sm:$0xff]  ;;  %v160_v48 = vld [vmem:[#allocation3 + $0x48] sm:$0xff]  ;;  %v3710_v50 = vcombine.low %v167_v38, %v171_v39  ;;  %v3712_v51 = vcombine.low %v168_v40, %v172_v41 }
  0x44   :  { %931 = vmatpush1.bf16.msra.mxu0 %v3734_v26  ;;  %972 = vmatpush1.bf16.msra.mxu1 %v3736_v27  ;;  %v163_v47 = vld [vmem:[#allocation3 + $0x60] sm:$0xff]  ;;  %v164_v49 = vld [vmem:[#allocation3 + $0x68] sm:$0xff] }
  0x45   :  { %932 = vmatprep.subr.bf16.mxu0 %v3727_v28  ;;  %973 = vmatprep.subr.bf16.mxu1 %v3729_v29  ;;  %v3703_v52 = vcombine.high %v159_v46, %v163_v47  ;;  %v4854_v53 = vld [vmem:[%s4975_s0] sm:$0xff]  ;;  %v3705_v54 = vcombine.high %v160_v48, %v164_v49  ;;  %v152_v58 = vld [vmem:[#allocation3 + $0x8] sm:$0xff]  ;;  %v3702_v60 = vcombine.low %v159_v46, %v163_v47 }
  0x46   :  { %v151_v55 = vld [vmem:[#allocation3] sm:$0xff]  ;;  %v4858_v57 = vcombine.high %v4854_v53, %v4854_v53  ;;  %v156_v59 = vld [vmem:[#allocation3 + $0x28] sm:$0xff]  ;;  %v3704_v61 = vcombine.low %v160_v48, %v164_v49 }
  0x47   :  { %v155_v56 = vld [vmem:[#allocation3 + $0x20] sm:$0xff]  ;;  %v3697_v63 = vcombine.high %v152_v58, %v156_v59  ;;  %v272_v2 = vld [vmem:[#allocation3 + $0x3c8] sm:$0xff]  ;;  %v3696_v5 = vcombine.low %v152_v58, %v156_v59 }
  0x48   :  { %933 = vmatpush1.bf16.msra.mxu0 %v3726_v34  ;;  %974 = vmatpush1.bf16.msra.mxu1 %v3728_v35  ;;  %v3695_v62 = vcombine.high %v151_v55, %v155_v56  ;;  %v271_v0 = vld [vmem:[#allocation3 + $0x3c0] sm:$0xff]  ;;  %v276_v3 = vld [vmem:[#allocation3 + $0x3e8] sm:$0xff]  ;;  %v3694_v4 = vcombine.low %v151_v55, %v155_v56 }
  0x49   :  { %934 = vmatprep.subr.bf16.mxu0 %v3719_v36  ;;  %975 = vmatprep.subr.bf16.mxu1 %v3721_v37  ;;  %v275_v1 = vld [vmem:[#allocation3 + $0x3e0] sm:$0xff]  ;;  %v3817_v7 = vcombine.high %v272_v2, %v276_v3  ;;  %v264_v10 = vld [vmem:[#allocation3 + $0x388] sm:$0xff]  ;;  %v3816_v13 = vcombine.low %v272_v2, %v276_v3  ;;  %v213_v3 = vld [vmem:[#allocation3 + $0x1f0] sm:$0xff] }
  0x4a   :  { %958 = vmatprep.mubr.bf16.mxu0 %v4858_v57  ;;  %999 = vmatprep.mubr.bf16.mxu1 %v4858_v57  ;;  %v3815_v6 = vcombine.high %v271_v0, %v275_v1  ;;  %v263_v8 = vld [vmem:[#allocation3 + $0x380] sm:$0xff]  ;;  %v268_v11 = vld [vmem:[#allocation3 + $0x3a8] sm:$0xff]  ;;  %v3814_v12 = vcombine.low %v271_v0, %v275_v1  ;;  %v209_v1 = vld [vmem:[#allocation3 + $0x1d0] sm:$0xff] }
  0x4b   :  { %v267_v9 = vld [vmem:[#allocation3 + $0x3a0] sm:$0xff]  ;;  %v3809_v15 = vcombine.high %v264_v10, %v268_v11  ;;  %v256_v18 = vld [vmem:[#allocation3 + $0x348] sm:$0xff]  ;;  %v3808_v21 = vcombine.low %v264_v10, %v268_v11  ;;  %v205_v11 = vld [vmem:[#allocation3 + $0x1b0] sm:$0xff] }
  0x4c   :  { %935 = vmatpush1.bf16.msra.mxu0 %v3718_v42  ;;  %976 = vmatpush1.bf16.msra.mxu1 %v3720_v43  ;;  %v3807_v14 = vcombine.high %v263_v8, %v267_v9  ;;  %v255_v16 = vld [vmem:[#allocation3 + $0x340] sm:$0xff]  ;;  %v260_v19 = vld [vmem:[#allocation3 + $0x368] sm:$0xff]  ;;  %v3806_v20 = vcombine.low %v263_v8, %v267_v9  ;;  %v3755_v8 = vcombine.high %v209_v1, %v213_v3  ;;  %v201_v9 = vld [vmem:[#allocation3 + $0x190] sm:$0xff] }
  0x4d   :  { %936 = vmatprep.subr.bf16.mxu0 %v3711_v44  ;;  %977 = vmatprep.subr.bf16.mxu1 %v3713_v45  ;;  %v259_v17 = vld [vmem:[#allocation3 + $0x360] sm:$0xff]  ;;  %v3801_v23 = vcombine.high %v256_v18, %v260_v19  ;;  %v248_v26 = vld [vmem:[#allocation3 + $0x308] sm:$0xff]  ;;  %v3800_v29 = vcombine.low %v256_v18, %v260_v19  ;;  %v193_v18 = vld [vmem:[#allocation3 + $0x150] sm:$0xff] }
  0x4e   :  { %v3799_v22 = vcombine.high %v255_v16, %v259_v17  ;;  %v247_v24 = vld [vmem:[#allocation3 + $0x300] sm:$0xff]  ;;  %v252_v27 = vld [vmem:[#allocation3 + $0x328] sm:$0xff]  ;;  %v3798_v28 = vcombine.low %v255_v16, %v259_v17  ;;  %v3747_v17 = vcombine.high %v201_v9, %v205_v11 }
  0x4f   :  { %v251_v25 = vld [vmem:[#allocation3 + $0x320] sm:$0xff]  ;;  %v3793_v31 = vcombine.high %v248_v26, %v252_v27  ;;  %v240_v34 = vld [vmem:[#allocation3 + $0x2c8] sm:$0xff]  ;;  %v3792_v37 = vcombine.low %v248_v26, %v252_v27  ;;  %v189_v27 = vld [vmem:[#allocation3 + $0x130] sm:$0xff] }
  0x50   :  { %937 = vmatpush1.bf16.msra.mxu0 %v3710_v50  ;;  %978 = vmatpush1.bf16.msra.mxu1 %v3712_v51  ;;  %v3791_v30 = vcombine.high %v247_v24, %v251_v25  ;;  %v239_v32 = vld [vmem:[#allocation3 + $0x2c0] sm:$0xff]  ;;  %v244_v35 = vld [vmem:[#allocation3 + $0x2e8] sm:$0xff]  ;;  %v3790_v36 = vcombine.low %v247_v24, %v251_v25  ;;  %v185_v25 = vld [vmem:[#allocation3 + $0x110] sm:$0xff] }
  0x51   :  { %938 = vmatprep.subr.bf16.mxu0 %v3703_v52  ;;  %979 = vmatprep.subr.bf16.mxu1 %v3705_v54  ;;  %v243_v33 = vld [vmem:[#allocation3 + $0x2e0] sm:$0xff]  ;;  %v3785_v40 = vcombine.high %v240_v34, %v244_v35  ;;  %v232_v42 = vld [vmem:[#allocation3 + $0x288] sm:$0xff]  ;;  %v3784_v45 = vcombine.low %v240_v34, %v244_v35  ;;  %v181_v35 = vld [vmem:[#allocation3 + $0xf0] sm:$0xff] }
  0x52   :  { %v3783_v38 = vcombine.high %v239_v32, %v243_v33  ;;  %v231_v39 = vld [vmem:[#allocation3 + $0x280] sm:$0xff]  ;;  %v236_v43 = vld [vmem:[#allocation3 + $0x2a8] sm:$0xff]  ;;  %v3782_v44 = vcombine.low %v239_v32, %v243_v33  ;;  %v3731_v32 = vcombine.high %v185_v25, %v189_v27  ;;  %v177_v33 = vld [vmem:[#allocation3 + $0xd0] sm:$0xff] }
  0x53   :  { %v235_v41 = vld [vmem:[#allocation3 + $0x2a0] sm:$0xff]  ;;  %v3777_v48 = vcombine.high %v232_v42, %v236_v43  ;;  %v224_v50 = vld [vmem:[#allocation3 + $0x248] sm:$0xff]  ;;  %v3776_v54 = vcombine.low %v232_v42, %v236_v43  ;;  %v173_v42 = vld [vmem:[#allocation3 + $0xb0] sm:$0xff] }
  0x54   :  { %939 = vmatpush1.bf16.msra.mxu0 %v3702_v60  ;;  %980 = vmatpush1.bf16.msra.mxu1 %v3704_v61  ;;  %v3775_v46 = vcombine.high %v231_v39, %v235_v41  ;;  %v223_v47 = vld [vmem:[#allocation3 + $0x240] sm:$0xff]  ;;  %v228_v51 = vld [vmem:[#allocation3 + $0x268] sm:$0xff]  ;;  %v3774_v52 = vcombine.low %v231_v39, %v235_v41  ;;  %v169_v41 = vld [vmem:[#allocation3 + $0x90] sm:$0xff] }
  0x55   :  { %940 = vmatprep.subr.bf16.mxu0 %v3695_v62  ;;  %981 = vmatprep.subr.bf16.mxu1 %v3697_v63  ;;  %v227_v49 = vld [vmem:[#allocation3 + $0x260] sm:$0xff]  ;;  %v3769_v58 = vcombine.high %v224_v50, %v228_v51  ;;  %v216_v60 = vld [vmem:[#allocation3 + $0x208] sm:$0xff]  ;;  %v3768_v63 = vcombine.low %v224_v50, %v228_v51  ;;  %v170_v43 = vld [vmem:[#allocation3 + $0x98] sm:$0xff] }
  0x56   :  { %v3767_v55 = vcombine.high %v223_v47, %v227_v49  ;;  %v215_v56 = vld [vmem:[#allocation3 + $0x200] sm:$0xff]  ;;  %v220_v61 = vld [vmem:[#allocation3 + $0x228] sm:$0xff]  ;;  %v3766_v62 = vcombine.low %v223_v47, %v227_v49  ;;  %v165_v47 = vld [vmem:[#allocation3 + $0x70] sm:$0xff]  ;;  %v3715_v49 = vcombine.high %v169_v41, %v173_v42 }
  0x57   :  { %v219_v59 = vld [vmem:[#allocation3 + $0x220] sm:$0xff]  ;;  %v3761_v2 = vcombine.high %v216_v60, %v220_v61  ;;  %v162_v50 = vld [vmem:[#allocation3 + $0x58] sm:$0xff] }
  0x58   :  { %941 = vmatpush1.bf16.msra.mxu0 %v3694_v4  ;;  %982 = vmatpush1.bf16.msra.mxu1 %v3696_v5  ;;  %v3759_v0 = vcombine.high %v215_v56, %v219_v59  ;;  %v210_v4 = vld [vmem:[#allocation3 + $0x1d8] sm:$0xff] }
  0x59   :  { %942 = vmatprep.subr.bf16.mxu0 %v3815_v6  ;;  %983 = vmatprep.subr.bf16.mxu1 %v3817_v7  ;;  %v214_v5 = vld [vmem:[#allocation3 + $0x1f8] sm:$0xff]  ;;  %v3758_v6 = vcombine.low %v215_v56, %v219_v59  ;;  %v3760_v7 = vcombine.low %v216_v60, %v220_v61  ;;  %v157_v56 = vld [vmem:[#allocation3 + $0x30] sm:$0xff] }
  0x5a   :  { %v3757_v10 = vcombine.high %v210_v4, %v214_v5  ;;  %v3756_v16 = vcombine.low %v210_v4, %v214_v5  ;;  %v166_v51 = vld [vmem:[#allocation3 + $0x78] sm:$0xff] }
  0x5b   :  { %v154_v60 = vld [vmem:[#allocation3 + $0x18] sm:$0xff] }
  0x5c   :  { %943 = vmatpush2.bf16.msra.mxu0 %v3814_v12  ;;  %984 = vmatpush2.bf16.msra.mxu1 %v3816_v13  ;;  %v202_v12 = vld [vmem:[#allocation3 + $0x198] sm:$0xff]  ;;  %v4864_v13 = vcombine.low %v4854_v53, %v4854_v53  ;;  %v3746_v53 = vcombine.low %v201_v9, %v205_v11  ;;  %v269_v9 = vld [vmem:[#allocation3 + $0x3b0] sm:$0xff] }
  0x5d   :  { %944 = vmatprep.subr.bf16.mxu0 %v3807_v14  ;;  %985 = vmatprep.subr.bf16.mxu1 %v3809_v15  ;;  %v206_v14 = vld [vmem:[#allocation3 + $0x1b8] sm:$0xff]  ;;  %v3754_v15 = vcombine.low %v209_v1, %v213_v3  ;;  %v277_v1 = vld [vmem:[#allocation3 + $0x3f0] sm:$0xff] }
  0x5e   :  { %v3749_v19 = vcombine.high %v202_v12, %v206_v14  ;;  %v158_v61 = vld [vmem:[#allocation3 + $0x38] sm:$0xff] }
  0x5f   :  { %v274_v4 = vld [vmem:[#allocation3 + $0x3d8] sm:$0xff] }
  0x60   :  { %945 = vmatpush2.bf16.msra.mxu0 %v3806_v20  ;;  %986 = vmatpush2.bf16.msra.mxu1 %v3808_v21  ;;  %v197_v20 = vld [vmem:[#allocation3 + $0x170] sm:$0xff]  ;;  %v194_v21 = vld [vmem:[#allocation3 + $0x158] sm:$0xff] }
  0x61   :  { %946 = vmatprep.subr.bf16.mxu0 %v3799_v22  ;;  %987 = vmatprep.subr.bf16.mxu1 %v3801_v23  ;;  %v198_v22 = vld [vmem:[#allocation3 + $0x178] sm:$0xff]  ;;  %v3748_v23 = vcombine.low %v202_v12, %v206_v14  ;;  %v3739_v24 = vcombine.high %v193_v18, %v197_v20 }
  0x62   :  { %v3741_v26 = vcombine.high %v194_v21, %v198_v22  ;;  %v278_v5 = vld [vmem:[#allocation3 + $0x3f8] sm:$0xff] }
  0x63   :  { %v266_v12 = vld [vmem:[#allocation3 + $0x398] sm:$0xff] }
  0x64   :  { %947 = vmatpush2.bf16.msra.mxu0 %v3798_v28  ;;  %988 = vmatpush2.bf16.msra.mxu1 %v3800_v29  ;;  %v186_v28 = vld [vmem:[#allocation3 + $0x118] sm:$0xff] }
  0x65   :  { %948 = vmatprep.subr.bf16.mxu0 %v3791_v30  ;;  %989 = vmatprep.subr.bf16.mxu1 %v3793_v31  ;;  %v190_v29 = vld [vmem:[#allocation3 + $0x138] sm:$0xff]  ;;  %v3738_v30 = vcombine.low %v193_v18, %v197_v20  ;;  %v3740_v31 = vcombine.low %v194_v21, %v198_v22  ;;  %v261_v18 = vld [vmem:[#allocation3 + $0x370] sm:$0xff] }
  0x66   :  { %v3733_v34 = vcombine.high %v186_v28, %v190_v29  ;;  %v3732_v39 = vcombine.low %v186_v28, %v190_v29  ;;  %v270_v14 = vld [vmem:[#allocation3 + $0x3b8] sm:$0xff] }
  0x67   :  { %v258_v21 = vld [vmem:[#allocation3 + $0x358] sm:$0xff] }
  0x68   :  { %949 = vmatpush2.bf16.msra.mxu0 %v3790_v36  ;;  %990 = vmatpush2.bf16.msra.mxu1 %v3792_v37  ;;  %v178_v36 = vld [vmem:[#allocation3 + $0xd8] sm:$0xff] }
  0x69   :  { %950 = vmatprep.subr.bf16.mxu0 %v3783_v38  ;;  %991 = vmatprep.subr.bf16.mxu1 %v3785_v40  ;;  %v182_v37 = vld [vmem:[#allocation3 + $0xf8] sm:$0xff]  ;;  %v3730_v38 = vcombine.low %v185_v25, %v189_v27  ;;  %v3723_v40 = vcombine.high %v177_v33, %v181_v35  ;;  %v253_v25 = vld [vmem:[#allocation3 + $0x330] sm:$0xff] }
  0x6a   :  { %v262_v22 = vld [vmem:[#allocation3 + $0x378] sm:$0xff] }
  0x6b   :  { %v250_v28 = vld [vmem:[#allocation3 + $0x318] sm:$0xff] }
  0x6c   :  { %951 = vmatpush2.bf16.msra.mxu0 %v3782_v44  ;;  %992 = vmatpush2.bf16.msra.mxu1 %v3784_v45  ;;  %v174_v44 = vld [vmem:[#allocation3 + $0xb8] sm:$0xff]  ;;  %v3722_v45 = vcombine.low %v177_v33, %v181_v35  ;;  %v245_v33 = vld [vmem:[#allocation3 + $0x2f0] sm:$0xff] }
  0x6d   :  { %952 = vmatprep.subr.bf16.mxu0 %v3775_v46  ;;  %993 = vmatprep.subr.bf16.mxu1 %v3777_v48  ;;  %v161_v46 = vld [vmem:[#allocation3 + $0x50] sm:$0xff]  ;;  %v3724_v48 = vcombine.low %v178_v36, %v182_v37  ;;  %v254_v29 = vld [vmem:[#allocation3 + $0x338] sm:$0xff] }
  0x6e   :  { %v3707_v59 = vcombine.high %v161_v46, %v165_v47 }
  0x70   :  { %953 = vmatpush2.bf16.msra.mxu0 %v3774_v52  ;;  %994 = vmatpush2.bf16.msra.mxu1 %v3776_v54  ;;  %v3717_v52 = vcombine.high %v170_v43, %v174_v44  ;;  %v3714_v54 = vcombine.low %v169_v41, %v173_v42  ;;  %v237_v41 = vld [vmem:[#allocation3 + $0x2b0] sm:$0xff] }
  0x71   :  { %954 = vmatprep.subr.bf16.mxu0 %v3767_v55  ;;  %995 = vmatprep.subr.bf16.mxu1 %v3769_v58  ;;  %v153_v55 = vld [vmem:[#allocation3 + $0x10] sm:$0xff]  ;;  %v3716_v58 = vcombine.low %v170_v43, %v174_v44  ;;  %v234_v43 = vld [vmem:[#allocation3 + $0x298] sm:$0xff] }
  0x72   :  { %v3699_v3 = vcombine.high %v153_v55, %v157_v56  ;;  %v238_v44 = vld [vmem:[#allocation3 + $0x2b8] sm:$0xff] }
  0x74   :  { %955 = vmatpush2.bf16.msra.mxu0 %v3766_v62  ;;  %996 = vmatpush2.bf16.msra.mxu1 %v3768_v63  ;;  %v3709_v62 = vcombine.high %v162_v50, %v166_v51  ;;  %v3706_v63 = vcombine.low %v161_v46, %v165_v47  ;;  %v225_v47 = vld [vmem:[#allocation3 + $0x250] sm:$0xff] }
  0x75   :  { %956 = vmatprep.subr.bf16.mxu0 %v3759_v0  ;;  %997 = vmatprep.subr.bf16.mxu1 %v3761_v2  ;;  %v273_v0 = vld [vmem:[#allocation3 + $0x3d0] sm:$0xff]  ;;  %v3708_v2 = vcombine.low %v162_v50, %v166_v51  ;;  %v226_v51 = vld [vmem:[#allocation3 + $0x258] sm:$0xff] }
  0x76   :  { %v3819_v11 = vcombine.high %v273_v0, %v277_v1 }
  0x78   :  { %957 = vmatpush2.bf16.msra.mxu0 %v3758_v6  ;;  %998 = vmatpush2.bf16.msra.mxu1 %v3760_v7  ;;  %v3701_v6 = vcombine.high %v154_v60, %v158_v61  ;;  %v3698_v7 = vcombine.low %v153_v55, %v157_v56  ;;  %v217_v56 = vld [vmem:[#allocation3 + $0x210] sm:$0xff] }
  0x79   :  { %1008 = vmatprep.subr.bf16.mxu0 %v3755_v8  ;;  %1049 = vmatprep.subr.bf16.mxu1 %v3757_v10  ;;  %v265_v8 = vld [vmem:[#allocation3 + $0x390] sm:$0xff]  ;;  %v3700_v10 = vcombine.low %v154_v60, %v158_v61  ;;  %v218_v61 = vld [vmem:[#allocation3 + $0x218] sm:$0xff] }
  0x7a   :  { %v3811_v20 = vcombine.high %v265_v8, %v269_v9 }
  0x7b   :  { %959 = vmatmul.mubr.bf16.vlgmr.msra.gmra.mxu0 %v4864_v13  ;;  %1000 = vmatmul.mubr.bf16.vlgmr.msra.gmra.mxu1 %v4864_v13 }
  0x7c   :  { %1009 = vmatpush1.bf16.msra.mxu0 %v3754_v15  ;;  %1050 = vmatpush1.bf16.msra.mxu1 %v3756_v16  ;;  %v3821_v15 = vcombine.high %v274_v4, %v278_v5  ;;  %v3818_v16 = vcombine.low %v273_v0, %v277_v1 }
  0x7d   :  { %1010 = vmatprep.subr.bf16.mxu0 %v3747_v17  ;;  %1051 = vmatprep.subr.bf16.mxu1 %v3749_v19  ;;  %v257_v17 = vld [vmem:[#allocation3 + $0x350] sm:$0xff]  ;;  %v3820_v19 = vcombine.low %v274_v4, %v278_v5 }
  0x7e   :  { %1040 = vmatprep.mubr.bf16.mxu0 %v4858_v57  ;;  %1081 = vmatprep.mubr.bf16.mxu1 %v4858_v57  ;;  %v3725_v57 = vcombine.high %v178_v36, %v182_v37  ;;  %v3803_v27 = vcombine.high %v257_v17, %v261_v18  ;;  %v242_v36 = vld [vmem:[#allocation3 + $0x2d8] sm:$0xff]  ;;  %v4197_v4 = vld [vmem:[#allocation5 + $0xe4] ss:$16 sps:$4 sm:$0xff]  }
  0x7f   :  { %v246_v37 = vld [vmem:[#allocation3 + $0x2f8] sm:$0xff] }
  0x80   :  { %1011 = vmatpush1.bf16.msra.mxu0 %v3746_v53  ;;  %1052 = vmatpush1.bf16.msra.mxu1 %v3748_v23  ;;  %v3813_v53 = vcombine.high %v266_v12, %v270_v14  ;;  %v3810_v23 = vcombine.low %v265_v8, %v269_v9  ;;  %v4195_v8 = vld [vmem:[#allocation5 + $0xe0] ss:$16 sps:$4 sm:$0xff]  }
  0x81   :  { %1012 = vmatprep.subr.bf16.mxu0 %v3739_v24  ;;  %1053 = vmatprep.subr.bf16.mxu1 %v3741_v26  ;;  %v249_v24 = vld [vmem:[#allocation3 + $0x310] sm:$0xff]  ;;  %v3812_v26 = vcombine.low %v266_v12, %v270_v14 }
  0x82   :  { %v3795_v35 = vcombine.high %v249_v24, %v253_v25  ;;  %v4198_v9 = vld [vmem:[#allocation5 + $0x2e0] ss:$16 sps:$4 sm:$0xff]  }
  0x83   :  { %v4201_v12 = vld [vmem:[#allocation5 + $0xc0] ss:$16 sps:$4 sm:$0xff]  }
  0x84   :  { %1013 = vmatpush1.bf16.msra.mxu0 %v3738_v30  ;;  %1054 = vmatpush1.bf16.msra.mxu1 %v3740_v31  ;;  %v3805_v30 = vcombine.high %v258_v21, %v262_v22  ;;  %v3802_v31 = vcombine.low %v257_v17, %v261_v18  ;;  %v4204_v14 = vld [vmem:[#allocation5 + $0x2c0] ss:$16 sps:$4 sm:$0xff]  }
  0x85   :  { %1014 = vmatprep.subr.bf16.mxu0 %v3731_v32  ;;  %1055 = vmatprep.subr.bf16.mxu1 %v3733_v34  ;;  %v241_v32 = vld [vmem:[#allocation3 + $0x2d0] sm:$0xff]  ;;  %v3804_v34 = vcombine.low %v258_v21, %v262_v22 }
  0x86   :  { %v3787_v42 = vcombine.high %v241_v32, %v245_v33  ;;  %v3786_v46 = vcombine.low %v241_v32, %v245_v33  ;;  %v4207_v17 = vld [vmem:[#allocation5 + $0xa0] ss:$16 sps:$4 sm:$0xff]   ;;  %v4239_v33 = vld [vmem:[#allocation5 + $0x4] ss:$16 sps:$4 sm:$0xff]  }
  0x87   :  { %v4210_v18 = vld [vmem:[#allocation5 + $0x2a0] ss:$16 sps:$4 sm:$0xff]  }
  0x88   :  { %1015 = vmatpush1.bf16.msra.mxu0 %v3730_v38  ;;  %1056 = vmatpush1.bf16.msra.mxu1 %v3732_v39  ;;  %v3797_v38 = vcombine.high %v250_v28, %v254_v29  ;;  %v3794_v39 = vcombine.low %v249_v24, %v253_v25  ;;  %v4213_v21 = vld [vmem:[#allocation5 + $0x80] ss:$16 sps:$4 sm:$0xff]   ;;  %v4227_v25 = vld [vmem:[#allocation5 + $0x44] ss:$16 sps:$4 sm:$0xff]  }
  0x89   :  { %1016 = vmatprep.subr.bf16.mxu0 %v3723_v40  ;;  %1057 = vmatprep.subr.bf16.mxu1 %v3725_v57  ;;  %v233_v40 = vld [vmem:[#allocation3 + $0x290] sm:$0xff]  ;;  %v3796_v57 = vcombine.low %v250_v28, %v254_v29 }
  0x8a   :  { %v3779_v50 = vcombine.high %v233_v40, %v237_v41  ;;  %v3778_v55 = vcombine.low %v233_v40, %v237_v41  ;;  %v4216_v22 = vld [vmem:[#allocation5 + $0x280] ss:$16 sps:$4 sm:$0xff]   ;;  %v4233_v29 = vld [vmem:[#allocation5 + $0x24] ss:$16 sps:$4 sm:$0xff]  }
  0x8b   :  { %v4222_v24 = vld [vmem:[#allocation5 + $0x260] ss:$16 sps:$4 sm:$0xff]   ;;  %v4251_v41 = vld [vmem:[#allocation5 + $0x1c4] ss:$16 sps:$4 sm:$0xff]  }
  0x8c   :  { %1017 = vmatpush1.bf16.msra.mxu0 %v3722_v45  ;;  %1058 = vmatpush1.bf16.msra.mxu1 %v3724_v48  ;;  %v3789_v45 = vcombine.high %v242_v36, %v246_v37  ;;  %v229_v48 = vld [vmem:[#allocation3 + $0x270] sm:$0xff] }
  0x8d   :  { %1018 = vmatprep.subr.bf16.mxu0 %v3715_v49  ;;  %1059 = vmatprep.subr.bf16.mxu1 %v3717_v52  ;;  %v3788_v49 = vcombine.low %v242_v36, %v246_v37  ;;  %v230_v52 = vld [vmem:[#allocation3 + $0x278] sm:$0xff]  ;;  %v3771_v60 = vcombine.high %v225_v47, %v229_v48  ;;  %v3770_v0 = vcombine.low %v225_v47, %v229_v48  ;;  %v4228_v28 = vld [vmem:[#allocation5 + $0x240] ss:$16 sps:$4 sm:$0xff]   ;;  %v4245_v37 = vld [vmem:[#allocation5 + $0x1e4] ss:$16 sps:$4 sm:$0xff]  }
  0x8e   :  { %v3772_v1 = vcombine.low %v226_v51, %v230_v52  ;;  %v4234_v32 = vld [vmem:[#allocation5 + $0x220] ss:$16 sps:$4 sm:$0xff]   ;;  %v4263_v48 = vld [vmem:[#allocation5 + $0x184] ss:$16 sps:$4 sm:$0xff]  }
  0x8f   :  { %v4240_v36 = vld [vmem:[#allocation5 + $0x200] ss:$16 sps:$4 sm:$0xff]  }
  0x90   :  { %1019 = vmatpush1.bf16.msra.mxu0 %v3714_v54  ;;  %1060 = vmatpush1.bf16.msra.mxu1 %v3716_v58  ;;  %v3781_v54 = vcombine.high %v234_v43, %v238_v44  ;;  %v221_v58 = vld [vmem:[#allocation3 + $0x230] sm:$0xff] }
  0x91   :  { %1020 = vmatprep.subr.bf16.mxu0 %v3707_v59  ;;  %1061 = vmatprep.subr.bf16.mxu1 %v3709_v62  ;;  %v3780_v59 = vcombine.low %v234_v43, %v238_v44  ;;  %v222_v62 = vld [vmem:[#allocation3 + $0x238] sm:$0xff]  ;;  %v3762_v5 = vcombine.low %v217_v56, %v221_v58  ;;  %v4246_v40 = vld [vmem:[#allocation5 + $0x3e0] ss:$16 sps:$4 sm:$0xff]   ;;  %v4257_v44 = vld [vmem:[#allocation5 + $0x1a4] ss:$16 sps:$4 sm:$0xff]  }
  0x92   :  { %v4252_v43 = vld [vmem:[#allocation5 + $0x3c0] ss:$16 sps:$4 sm:$0xff]  }
  0x93   :  { %v4258_v47 = vld [vmem:[#allocation5 + $0x3a0] ss:$16 sps:$4 sm:$0xff]  }
  0x94   :  { %1021 = vmatpush1.bf16.msra.mxu0 %v3706_v63  ;;  %1062 = vmatpush1.bf16.msra.mxu1 %v3708_v2  ;;  %v3773_v63 = vcombine.high %v226_v51, %v230_v52  ;;  %v3763_v2 = vcombine.high %v217_v56, %v221_v58  ;;  %v4264_v51 = vld [vmem:[#allocation5 + $0x380] ss:$16 sps:$4 sm:$0xff]   ;;  %v4269_v52 = vld [vmem:[#allocation5 + $0x164] ss:$16 sps:$4 sm:$0xff]  }
  0x95   :  { %1022 = vmatprep.subr.bf16.mxu0 %v3699_v3  ;;  %1063 = vmatprep.subr.bf16.mxu1 %v3701_v6  ;;  %v3765_v3 = vcombine.high %v218_v61, %v222_v62  ;;  %v4200_v6 = vld [vmem:[#allocation5 + $0x2e4] ss:$16 sps:$4 sm:$0xff]   ;;  %v4270_v56 = vld [vmem:[#allocation5 + $0x360] ss:$16 sps:$4 sm:$0xff]  }
  0x96   :  { %v4275_v58 = vld [vmem:[#allocation5 + $0x144] ss:$16 sps:$4 sm:$0xff]  }
  0x98   :  { %1023 = vmatpush1.bf16.msra.mxu0 %v3698_v7  ;;  %1064 = vmatpush1.bf16.msra.mxu1 %v3700_v10  ;;  %v3764_v7 = vcombine.low %v218_v61, %v222_v62  ;;  %v4203_v10 = vld [vmem:[#allocation5 + $0xc4] ss:$16 sps:$4 sm:$0xff]   ;;  %v4276_v61 = vld [vmem:[#allocation5 + $0x340] ss:$16 sps:$4 sm:$0xff]  }
  0x99   :  { %1024 = vmatprep.subr.bf16.mxu0 %v3819_v11  ;;  %1065 = vmatprep.subr.bf16.mxu1 %v3821_v15  ;;  %v4206_v11 = vld [vmem:[#allocation5 + $0x2c4] ss:$16 sps:$4 sm:$0xff]  }
  0x9a   :  { %v4209_v15 = vld [vmem:[#allocation5 + $0xa4] ss:$16 sps:$4 sm:$0xff]  }
  0x9b   :  { %v4281_v62 = vld [vmem:[#allocation5 + $0x124] ss:$16 sps:$4 sm:$0xff]  }
  0x9c   :  { %1025 = vmatpush2.bf16.msra.mxu0 %v3818_v16  ;;  %1066 = vmatpush2.bf16.msra.mxu1 %v3820_v19  ;;  %v4212_v16 = vld [vmem:[#allocation5 + $0x2a4] ss:$16 sps:$4 sm:$0xff]  }
  0x9d   :  { %1026 = vmatprep.subr.bf16.mxu0 %v3811_v20  ;;  %1067 = vmatprep.subr.bf16.mxu1 %v3813_v53  ;;  %v4215_v19 = vld [vmem:[#allocation5 + $0x84] ss:$16 sps:$4 sm:$0xff]  }
  0x9e   :  { %v4218_v20 = vld [vmem:[#allocation5 + $0x284] ss:$16 sps:$4 sm:$0xff]  }
  0x9f   :  { %v4221_v53 = vld [vmem:[#allocation5 + $0x64] ss:$16 sps:$4 sm:$0xff]  }
  0xa0   :  { %1027 = vmatpush2.bf16.msra.mxu0 %v3810_v23  ;;  %1068 = vmatpush2.bf16.msra.mxu1 %v3812_v26  ;;  %v4224_v23 = vld [vmem:[#allocation5 + $0x264] ss:$16 sps:$4 sm:$0xff]  }
  0xa1   :  { %1028 = vmatprep.subr.bf16.mxu0 %v3803_v27  ;;  %1069 = vmatprep.subr.bf16.mxu1 %v3805_v30  ;;  %v4230_v26 = vld [vmem:[#allocation5 + $0x244] ss:$16 sps:$4 sm:$0xff]   ;;  %v4225_v27 = vld [vmem:[#allocation5 + $0x40] ss:$16 sps:$4 sm:$0xff]  }
  0xa2   :  { %v4236_v30 = vld [vmem:[#allocation5 + $0x224] ss:$16 sps:$4 sm:$0xff]  }
  0xa4   :  { %1029 = vmatpush2.bf16.msra.mxu0 %v3802_v31  ;;  %1070 = vmatpush2.bf16.msra.mxu1 %v3804_v34  ;;  %v4231_v31 = vld [vmem:[#allocation5 + $0x20] ss:$16 sps:$4 sm:$0xff]   ;;  %v4242_v34 = vld [vmem:[#allocation5 + $0x204] ss:$16 sps:$4 sm:$0xff]  }
  0xa5   :  { %1030 = vmatprep.subr.bf16.mxu0 %v3795_v35  ;;  %1071 = vmatprep.subr.bf16.mxu1 %v3797_v38  ;;  %v4237_v35 = vld [vmem:[#allocation5] ss:$16 sps:$4 sm:$0xff]   ;;  %v4248_v38 = vld [vmem:[#allocation5 + $0x3e4] ss:$16 sps:$4 sm:$0xff]  }
  0xa8   :  { %1031 = vmatpush2.bf16.msra.mxu0 %v3794_v39  ;;  %1072 = vmatpush2.bf16.msra.mxu1 %v3796_v57  ;;  %v4243_v39 = vld [vmem:[#allocation5 + $0x1e0] ss:$16 sps:$4 sm:$0xff]   ;;  %v4254_v57 = vld [vmem:[#allocation5 + $0x3c4] ss:$16 sps:$4 sm:$0xff]  }
  0xa9   :  { %1032 = vmatprep.subr.bf16.mxu0 %v3787_v42  ;;  %1073 = vmatprep.subr.bf16.mxu1 %v3789_v45  ;;  %v4249_v42 = vld [vmem:[#allocation5 + $0x1c0] ss:$16 sps:$4 sm:$0xff]   ;;  %v4260_v45 = vld [vmem:[#allocation5 + $0x3a4] ss:$16 sps:$4 sm:$0xff]  }
  0xac   :  { %1033 = vmatpush2.bf16.msra.mxu0 %v3786_v46  ;;  %1074 = vmatpush2.bf16.msra.mxu1 %v3788_v49  ;;  %v4255_v46 = vld [vmem:[#allocation5 + $0x1a0] ss:$16 sps:$4 sm:$0xff]   ;;  %v4266_v49 = vld [vmem:[#allocation5 + $0x384] ss:$16 sps:$4 sm:$0xff]  }
  0xad   :  { %1034 = vmatprep.subr.bf16.mxu0 %v3779_v50  ;;  %1075 = vmatprep.subr.bf16.mxu1 %v3781_v54  ;;  %v4261_v50 = vld [vmem:[#allocation5 + $0x180] ss:$16 sps:$4 sm:$0xff]   ;;  %v4272_v54 = vld [vmem:[#allocation5 + $0x364] ss:$16 sps:$4 sm:$0xff]  }
  0xb0   :  { %1035 = vmatpush2.bf16.msra.mxu0 %v3778_v55  ;;  %1076 = vmatpush2.bf16.msra.mxu1 %v3780_v59  ;;  %v4267_v55 = vld [vmem:[#allocation5 + $0x160] ss:$16 sps:$4 sm:$0xff]   ;;  %v4278_v59 = vld [vmem:[#allocation5 + $0x344] ss:$16 sps:$4 sm:$0xff]  }
  0xb1   :  { %1036 = vmatprep.subr.bf16.mxu0 %v3771_v60  ;;  %1077 = vmatprep.subr.bf16.mxu1 %v3773_v63  ;;  %v4273_v60 = vld [vmem:[#allocation5 + $0x140] ss:$16 sps:$4 sm:$0xff]   ;;  %v4284_v63 = vld [vmem:[#allocation5 + $0x324] ss:$16 sps:$4 sm:$0xff]  }
  0xb4   :  { %1037 = vmatpush2.bf16.msra.mxu0 %v3770_v0  ;;  %1078 = vmatpush2.bf16.msra.mxu1 %v3772_v1  ;;  %v4279_v0 = vld [vmem:[#allocation5 + $0x120] ss:$16 sps:$4 sm:$0xff]  }
  0xb5   :  { %1038 = vmatprep.subr.bf16.mxu0 %v3763_v2  ;;  %1079 = vmatprep.subr.bf16.mxu1 %v3765_v3  ;;  %v4282_v1 = vld [vmem:[#allocation5 + $0x320] ss:$16 sps:$4 sm:$0xff]   ;;  %v4287_v2 = vld [vmem:[#allocation5 + $0x104] ss:$16 sps:$4 sm:$0xff]  }
  0xb6   :  { %v4290_v3 = vld [vmem:[#allocation5 + $0x304] ss:$16 sps:$4 sm:$0xff]  }
  0xb8   :  { %1039 = vmatpush2.bf16.msra.mxu0 %v3762_v5  ;;  %1080 = vmatpush2.bf16.msra.mxu1 %v3764_v7  ;;  %v4288_v5 = vld [vmem:[#allocation5 + $0x300] ss:$16 sps:$4 sm:$0xff]   ;;  %v4296_v7 = vld [vmem:[#allocation5 + $0x6e4] ss:$16 sps:$4 sm:$0xff]  }
  0xb9   :  { %2691 = vmatprep.subr.bf16.mxu0 %v4197_v4  ;;  %2732 = vmatprep.subr.bf16.mxu1 %v4200_v6  ;;  %v4285_v4 = vld [vmem:[#allocation5 + $0x100] ss:$16 sps:$4 sm:$0xff]   ;;  %v4293_v6 = vld [vmem:[#allocation5 + $0x4e4] ss:$16 sps:$4 sm:$0xff]  }
  0xbb   :  { %1041 = vmatmul.mubr.bf16.vlgmr.msra.gmra.mxu0 %v4864_v13  ;;  %1082 = vmatmul.mubr.bf16.vlgmr.msra.gmra.mxu1 %v4864_v13  ;;  %v4219_v13 = vld [vmem:[#allocation5 + $0x60] ss:$16 sps:$4 sm:$0xff]  }
  0xbc   :  { %2692 = vmatpush1.bf16.msra.mxu0 %v4195_v8  ;;  %2733 = vmatpush1.bf16.msra.mxu1 %v4198_v9  ;;  %v94_v8 = vlaneseq }
  0xbd   :  { %2693 = vmatprep.subr.bf16.mxu0 %v4203_v10  ;;  %2734 = vmatprep.subr.bf16.mxu1 %v4206_v11  ;;  %v4880_v11 = vld [vmem:[%s4977_s2] sm:$0xff] }
  0xbe   :  { %v4872_v9 = vshrl.u32 %v94_v8, 7  ;;  %v4342_v8 = vld [vmem:[#allocation5 + $0x7e0] ss:$16 sps:$4 sm:$0xff]  }
  0xc0   :  { %2694 = vmatpush1.bf16.msra.mxu0 %v4201_v12  ;;  %2735 = vmatpush1.bf16.msra.mxu1 %v4204_v14  ;;  %v4875_v10 = vsub.s32 0, %v4872_v9  ;;  %v104_v12 = vsub.s32 2, %v4872_v9  ;;  %v4884_v14 = vsub.s32 1, %v4872_v9 }
  0xc1   :  { %2695 = vmatprep.subr.bf16.mxu0 %v4209_v15  ;;  %2736 = vmatprep.subr.bf16.mxu1 %v4212_v16  ;;  %v108_v15 = vsub.s32 3, %v4872_v9 }
  0xc2   :  { %v97_v16 = vrot.slane %v4880_v11, %v4875_v10 }
  0xc4   :  { %2696 = vmatpush1.bf16.msra.mxu0 %v4207_v17  ;;  %2737 = vmatpush1.bf16.msra.mxu1 %v4210_v18  ;;  %v105_v17 = vrot.slane %v4880_v11, %v104_v12  ;;  %v101_v18 = vrot.slane %v4880_v11, %v4884_v14 }
  0xc5   :  { %2697 = vmatprep.subr.bf16.mxu0 %v4215_v19  ;;  %2738 = vmatprep.subr.bf16.mxu1 %v4218_v20  ;;  %v109_v20 = vrot.slane %v4880_v11, %v108_v15 }
  0xc8   :  { %2698 = vmatpush1.bf16.msra.mxu0 %v4213_v21  ;;  %2739 = vmatpush1.bf16.msra.mxu1 %v4216_v22 }
  0xc9   :  { %2699 = vmatprep.subr.bf16.mxu0 %v4221_v53  ;;  %2740 = vmatprep.subr.bf16.mxu1 %v4224_v23 }
  0xcc   :  { %2700 = vmatpush1.bf16.msra.mxu0 %v4219_v13  ;;  %2741 = vmatpush1.bf16.msra.mxu1 %v4222_v24 }
  0xcd   :  { %2701 = vmatprep.subr.bf16.mxu0 %v4227_v25  ;;  %2742 = vmatprep.subr.bf16.mxu1 %v4230_v26 }
  0xd0   :  { %2702 = vmatpush1.bf16.msra.mxu0 %v4225_v27  ;;  %2743 = vmatpush1.bf16.msra.mxu1 %v4228_v28 }
  0xd1   :  { %2703 = vmatprep.subr.bf16.mxu0 %v4233_v29  ;;  %2744 = vmatprep.subr.bf16.mxu1 %v4236_v30 }
  0xd4   :  { %2704 = vmatpush1.bf16.msra.mxu0 %v4231_v31  ;;  %2745 = vmatpush1.bf16.msra.mxu1 %v4234_v32 }
  0xd5   :  { %2705 = vmatprep.subr.bf16.mxu0 %v4239_v33  ;;  %2746 = vmatprep.subr.bf16.mxu1 %v4242_v34 }
  0xd8   :  { %2706 = vmatpush1.bf16.msra.mxu0 %v4237_v35  ;;  %2747 = vmatpush1.bf16.msra.mxu1 %v4240_v36  ;;  %v4291_v36 = vld [vmem:[#allocation5 + $0x4e0] ss:$16 sps:$4 sm:$0xff]  }
  0xd9   :  { %2707 = vmatprep.subr.bf16.mxu0 %v4245_v37  ;;  %2748 = vmatprep.subr.bf16.mxu1 %v4248_v38 }
  0xdc   :  { %2708 = vmatpush2.bf16.msra.mxu0 %v4243_v39  ;;  %2749 = vmatpush2.bf16.msra.mxu1 %v4246_v40  ;;  %v4294_v39 = vld [vmem:[#allocation5 + $0x6e0] ss:$16 sps:$4 sm:$0xff]   ;;  %v4299_v40 = vld [vmem:[#allocation5 + $0x4c4] ss:$16 sps:$4 sm:$0xff]  }
  0xdd   :  { %2709 = vmatprep.subr.bf16.mxu0 %v4251_v41  ;;  %2750 = vmatprep.subr.bf16.mxu1 %v4254_v57  ;;  %v4302_v41 = vld [vmem:[#allocation5 + $0x6c4] ss:$16 sps:$4 sm:$0xff]   ;;  %v4297_v57 = vld [vmem:[#allocation5 + $0x4c0] ss:$16 sps:$4 sm:$0xff]  }
  0xe0   :  { %2710 = vmatpush2.bf16.msra.mxu0 %v4249_v42  ;;  %2751 = vmatpush2.bf16.msra.mxu1 %v4252_v43  ;;  %v4300_v42 = vld [vmem:[#allocation5 + $0x6c0] ss:$16 sps:$4 sm:$0xff]   ;;  %v4305_v43 = vld [vmem:[#allocation5 + $0x4a4] ss:$16 sps:$4 sm:$0xff]  }
  0xe1   :  { %2711 = vmatprep.subr.bf16.mxu0 %v4257_v44  ;;  %2752 = vmatprep.subr.bf16.mxu1 %v4260_v45  ;;  %v4308_v44 = vld [vmem:[#allocation5 + $0x6a4] ss:$16 sps:$4 sm:$0xff]   ;;  %v4303_v45 = vld [vmem:[#allocation5 + $0x4a0] ss:$16 sps:$4 sm:$0xff]  }
  0xe4   :  { %2712 = vmatpush2.bf16.msra.mxu0 %v4255_v46  ;;  %2753 = vmatpush2.bf16.msra.mxu1 %v4258_v47  ;;  %v4306_v46 = vld [vmem:[#allocation5 + $0x6a0] ss:$16 sps:$4 sm:$0xff]   ;;  %v4311_v47 = vld [vmem:[#allocation5 + $0x484] ss:$16 sps:$4 sm:$0xff]  }
  0xe5   :  { %2713 = vmatprep.subr.bf16.mxu0 %v4263_v48  ;;  %2754 = vmatprep.subr.bf16.mxu1 %v4266_v49  ;;  %v4314_v48 = vld [vmem:[#allocation5 + $0x684] ss:$16 sps:$4 sm:$0xff]   ;;  %v4309_v49 = vld [vmem:[#allocation5 + $0x480] ss:$16 sps:$4 sm:$0xff]  }
  0xe8   :  { %2714 = vmatpush2.bf16.msra.mxu0 %v4261_v50  ;;  %2755 = vmatpush2.bf16.msra.mxu1 %v4264_v51  ;;  %v4312_v50 = vld [vmem:[#allocation5 + $0x680] ss:$16 sps:$4 sm:$0xff]   ;;  %v4317_v51 = vld [vmem:[#allocation5 + $0x464] ss:$16 sps:$4 sm:$0xff]  }
  0xe9   :  { %2715 = vmatprep.subr.bf16.mxu0 %v4269_v52  ;;  %2756 = vmatprep.subr.bf16.mxu1 %v4272_v54  ;;  %v4320_v52 = vld [vmem:[#allocation5 + $0x664] ss:$16 sps:$4 sm:$0xff]   ;;  %v4315_v54 = vld [vmem:[#allocation5 + $0x460] ss:$16 sps:$4 sm:$0xff]  }
  0xec   :  { %2716 = vmatpush2.bf16.msra.mxu0 %v4267_v55  ;;  %2757 = vmatpush2.bf16.msra.mxu1 %v4270_v56  ;;  %v4318_v55 = vld [vmem:[#allocation5 + $0x660] ss:$16 sps:$4 sm:$0xff]   ;;  %v4323_v56 = vld [vmem:[#allocation5 + $0x444] ss:$16 sps:$4 sm:$0xff]  }
  0xed   :  { %2717 = vmatprep.subr.bf16.mxu0 %v4275_v58  ;;  %2758 = vmatprep.subr.bf16.mxu1 %v4278_v59  ;;  %v4326_v58 = vld [vmem:[#allocation5 + $0x644] ss:$16 sps:$4 sm:$0xff]   ;;  %v4321_v59 = vld [vmem:[#allocation5 + $0x440] ss:$16 sps:$4 sm:$0xff]  }
  0xf0   :  { %2718 = vmatpush2.bf16.msra.mxu0 %v4273_v60  ;;  %2759 = vmatpush2.bf16.msra.mxu1 %v4276_v61  ;;  %v4324_v60 = vld [vmem:[#allocation5 + $0x640] ss:$16 sps:$4 sm:$0xff]   ;;  %v4329_v61 = vld [vmem:[#allocation5 + $0x424] ss:$16 sps:$4 sm:$0xff]  }
  0xf1   :  { %2719 = vmatprep.subr.bf16.mxu0 %v4281_v62  ;;  %2760 = vmatprep.subr.bf16.mxu1 %v4284_v63  ;;  %v4332_v62 = vld [vmem:[#allocation5 + $0x624] ss:$16 sps:$4 sm:$0xff]   ;;  %v4327_v63 = vld [vmem:[#allocation5 + $0x420] ss:$16 sps:$4 sm:$0xff]  }
  0xf4   :  { %2720 = vmatpush2.bf16.msra.mxu0 %v4279_v0  ;;  %2761 = vmatpush2.bf16.msra.mxu1 %v4282_v1  ;;  %v4330_v0 = vld [vmem:[#allocation5 + $0x620] ss:$16 sps:$4 sm:$0xff]   ;;  %v4335_v1 = vld [vmem:[#allocation5 + $0x404] ss:$16 sps:$4 sm:$0xff]  }
  0xf5   :  { %2721 = vmatprep.subr.bf16.mxu0 %v4287_v2  ;;  %2762 = vmatprep.subr.bf16.mxu1 %v4290_v3  ;;  %v4338_v2 = vld [vmem:[#allocation5 + $0x604] ss:$16 sps:$4 sm:$0xff]   ;;  %v4333_v3 = vld [vmem:[#allocation5 + $0x400] ss:$16 sps:$4 sm:$0xff]  }
  0xf8   :  { %2722 = vmatpush2.bf16.msra.mxu0 %v4285_v4  ;;  %2763 = vmatpush2.bf16.msra.mxu1 %v4288_v5  ;;  %v4336_v4 = vld [vmem:[#allocation5 + $0x600] ss:$16 sps:$4 sm:$0xff]   ;;  %v4341_v5 = vld [vmem:[#allocation5 + $0x5e4] ss:$16 sps:$4 sm:$0xff]  }
  0xf9   :  { %2773 = vmatprep.subr.bf16.mxu0 %v4293_v6  ;;  %2814 = vmatprep.subr.bf16.mxu1 %v4296_v7  ;;  %v4344_v6 = vld [vmem:[#allocation5 + $0x7e4] ss:$16 sps:$4 sm:$0xff]   ;;  %v4339_v7 = vld [vmem:[#allocation5 + $0x5e0] ss:$16 sps:$4 sm:$0xff]  }
 0x13b   :  { %v960_v19 = vpop.f32.mrf.mxu0  ;;  %v1001_v22 = vpop.f32.mrf.mxu1 }
 0x13c   :  { %v1090_v21 = vadd.f32 %v960_v19, %v97_v16  ;;  %v1092_v53 = vadd.f32 %v1001_v22, %v105_v17  ;;  %v4347_v16 = vld [vmem:[#allocation5 + $0x5c4] ss:$16 sps:$4 sm:$0xff]   ;;  %v4348_v19 = vld [vmem:[#allocation5 + $0x7c0] ss:$16 sps:$4 sm:$0xff]  }
 0x13d   :  { %v962_v23 = vpop.f32.mrf.mxu0  ;;  %v1003_v24 = vpop.f32.mrf.mxu1  ;;  %v4350_v17 = vld [vmem:[#allocation5 + $0x7c4] ss:$16 sps:$4 sm:$0xff]   ;;  %v4351_v22 = vld [vmem:[#allocation5 + $0x5a0] ss:$16 sps:$4 sm:$0xff]  }
 0x13e   :  { %v1091_v13 = vadd.f32 %v962_v23, %v101_v18  ;;  %v1117_v25 = vmax.f32 %v1090_v21, 0.0  ;;  %v1119_v26 = vmax.f32 %v1092_v53, 0.0  ;;  %v1093_v27 = vadd.f32 %v1003_v24, %v109_v20  ;;  %v4345_v18 = vld [vmem:[#allocation5 + $0x5c0] ss:$16 sps:$4 sm:$0xff]   ;;  %v4353_v20 = vld [vmem:[#allocation5 + $0x5a4] ss:$16 sps:$4 sm:$0xff]  }
 0x13f   :  { %v964_v28 = vpop.f32.mrf.mxu0  ;;  %v1005_v30 = vpop.f32.mrf.mxu1  ;;  %v4356_v21 = vld [vmem:[#allocation5 + $0x7a4] ss:$16 sps:$4 sm:$0xff]   ;;  %v4354_v53 = vld [vmem:[#allocation5 + $0x7a0] ss:$16 sps:$4 sm:$0xff]  }
 0x140   :  { %v1118_v29 = vmax.f32 %v1091_v13, 0.0  ;;  %v1120_v31 = vmax.f32 %v1093_v27, 0.0  ;;  %v4897_v33 = vpack.c.bf16 %v1119_v26, %v1119_v26  ;;  %v4901_v37 = vpack.c.bf16 %v1117_v25, %v1117_v25  ;;  %v4359_v23 = vld [vmem:[#allocation5 + $0x584] ss:$16 sps:$4 sm:$0xff]   ;;  %v4357_v24 = vld [vmem:[#allocation5 + $0x580] ss:$16 sps:$4 sm:$0xff]  }
 0x141   :  { %v965_v32 = vpop.f32.mrf.mxu0  ;;  %v1006_v35 = vpop.f32.mrf.mxu1  ;;  %v4362_v13 = vld [vmem:[#allocation5 + $0x784] ss:$16 sps:$4 sm:$0xff]   ;;  %v4360_v25 = vld [vmem:[#allocation5 + $0x780] ss:$16 sps:$4 sm:$0xff]  }
 0x142   :  { %v4899_v34 = vpack.c.bf16 %v1118_v29, %v1118_v29  ;;  %v4903_v38 = vpack.c.bf16 %v1120_v31, %v1120_v31  ;;  %v4365_v26 = vld [vmem:[#allocation5 + $0x564] ss:$16 sps:$4 sm:$0xff]   ;;  %v4363_v28 = vld [vmem:[#allocation5 + $0x560] ss:$16 sps:$4 sm:$0xff]   ;;  %v112_v32 = vsub.s32 4, %v4872_v9  ;;  %v120_v35 = vsub.s32 6, %v4872_v9 }
 0x143   :  { %v4368_v27 = vld [vmem:[#allocation5 + $0x764] ss:$16 sps:$4 sm:$0xff]   ;;  %v4366_v29 = vld [vmem:[#allocation5 + $0x760] ss:$16 sps:$4 sm:$0xff]  }
 0x144   :  { %2723 = vmatprep.mubr.bf16.mxu0 %v4899_v34  ;;  %2764 = vmatprep.mubr.bf16.mxu1 %v4903_v38  ;;  %v4371_v30 = vld [vmem:[#allocation5 + $0x544] ss:$16 sps:$4 sm:$0xff]  }
 0x145   :  { %2724 = vmatmul.mubr.bf16.vlgmr.msra.gmra.mxu0 %v4901_v37  ;;  %2765 = vmatmul.mubr.bf16.vlgmr.msra.gmra.mxu1 %v4897_v33  ;;  %v4374_v31 = vld [vmem:[#allocation5 + $0x744] ss:$16 sps:$4 sm:$0xff]  }
 0x146   :  { %2774 = vmatpush1.bf16.msra.mxu0 %v4291_v36  ;;  %2815 = vmatpush1.bf16.msra.mxu1 %v4294_v39  ;;  %v4369_v36 = vld [vmem:[#allocation5 + $0x540] ss:$16 sps:$4 sm:$0xff]   ;;  %v116_v39 = vsub.s32 5, %v4872_v9 }
 0x147   :  { %2775 = vmatprep.subr.bf16.mxu0 %v4299_v40  ;;  %2816 = vmatprep.subr.bf16.mxu1 %v4302_v41  ;;  %v4372_v40 = vld [vmem:[#allocation5 + $0x740] ss:$16 sps:$4 sm:$0xff]   ;;  %v4377_v41 = vld [vmem:[#allocation5 + $0x524] ss:$16 sps:$4 sm:$0xff]  }
 0x14a   :  { %2776 = vmatpush1.bf16.msra.mxu0 %v4297_v57  ;;  %2817 = vmatpush1.bf16.msra.mxu1 %v4300_v42  ;;  %v124_v57 = vsub.s32 7, %v4872_v9  ;;  %v113_v42 = vrot.slane %v4880_v11, %v112_v32  ;;  %v4414_v32 = vld [vmem:[#allocation5 + $0x268] ss:$16 sps:$4 sm:$0xff]  }
 0x14b   :  { %2777 = vmatprep.subr.bf16.mxu0 %v4305_v43  ;;  %2818 = vmatprep.subr.bf16.mxu1 %v4308_v44  ;;  %v4380_v43 = vld [vmem:[#allocation5 + $0x724] ss:$16 sps:$4 sm:$0xff]   ;;  %v121_v44 = vrot.slane %v4880_v11, %v120_v35  ;;  %v4419_v35 = vld [vmem:[#allocation5 + $0x4c] ss:$16 sps:$4 sm:$0xff]  }
 0x14e   :  { %2778 = vmatpush1.bf16.msra.mxu0 %v4303_v45  ;;  %2819 = vmatpush1.bf16.msra.mxu1 %v4306_v46  ;;  %v4375_v45 = vld [vmem:[#allocation5 + $0x520] ss:$16 sps:$4 sm:$0xff]   ;;  %v117_v46 = vrot.slane %v4880_v11, %v116_v39  ;;  %v4417_v39 = vld [vmem:[#allocation5 + $0x48] ss:$16 sps:$4 sm:$0xff]  }
 0x14f   :  { %2779 = vmatprep.subr.bf16.mxu0 %v4311_v47  ;;  %2820 = vmatprep.subr.bf16.mxu1 %v4314_v48  ;;  %v4378_v48 = vld [vmem:[#allocation5 + $0x720] ss:$16 sps:$4 sm:$0xff]  }
 0x152   :  { %2780 = vmatpush1.bf16.msra.mxu0 %v4309_v49  ;;  %2821 = vmatpush1.bf16.msra.mxu1 %v4312_v50  ;;  %v125_v49 = vrot.slane %v4880_v11, %v124_v57  ;;  %v4383_v50 = vld [vmem:[#allocation5 + $0x504] ss:$16 sps:$4 sm:$0xff]   ;;  %v4428_v57 = vld [vmem:[#allocation5 + $0x22c] ss:$16 sps:$4 sm:$0xff]  }
 0x153   :  { %2781 = vmatprep.subr.bf16.mxu0 %v4317_v51  ;;  %2822 = vmatprep.subr.bf16.mxu1 %v4320_v52 }
 0x156   :  { %2782 = vmatpush1.bf16.msra.mxu0 %v4315_v54  ;;  %2823 = vmatpush1.bf16.msra.mxu1 %v4318_v55  ;;  %v4386_v54 = vld [vmem:[#allocation5 + $0x704] ss:$16 sps:$4 sm:$0xff]  }
 0x157   :  { %2783 = vmatprep.subr.bf16.mxu0 %v4323_v56  ;;  %2824 = vmatprep.subr.bf16.mxu1 %v4326_v58 }
 0x15a   :  { %2784 = vmatpush1.bf16.msra.mxu0 %v4321_v59  ;;  %2825 = vmatpush1.bf16.msra.mxu1 %v4324_v60  ;;  %v4381_v60 = vld [vmem:[#allocation5 + $0x500] ss:$16 sps:$4 sm:$0xff]  }
 0x15b   :  { %2785 = vmatprep.subr.bf16.mxu0 %v4329_v61  ;;  %2826 = vmatprep.subr.bf16.mxu1 %v4332_v62 }
 0x15e   :  { %2786 = vmatpush1.bf16.msra.mxu0 %v4327_v63  ;;  %2827 = vmatpush1.bf16.msra.mxu1 %v4330_v0 }
 0x15f   :  { %2787 = vmatprep.subr.bf16.mxu0 %v4335_v1  ;;  %2828 = vmatprep.subr.bf16.mxu1 %v4338_v2  ;;  %v4384_v1 = vld [vmem:[#allocation5 + $0x700] ss:$16 sps:$4 sm:$0xff]   ;;  %v4389_v2 = vld [vmem:[#allocation5 + $0xec] ss:$16 sps:$4 sm:$0xff]  }
 0x162   :  { %2788 = vmatpush1.bf16.msra.mxu0 %v4333_v3  ;;  %2829 = vmatpush1.bf16.msra.mxu1 %v4336_v4  ;;  %v4392_v4 = vld [vmem:[#allocation5 + $0x2ec] ss:$16 sps:$4 sm:$0xff]  }
 0x163   :  { %2789 = vmatprep.subr.bf16.mxu0 %v4341_v5  ;;  %2830 = vmatprep.subr.bf16.mxu1 %v4344_v6 }
 0x166   :  { %2790 = vmatpush2.bf16.msra.mxu0 %v4339_v7  ;;  %2831 = vmatpush2.bf16.msra.mxu1 %v4342_v8 }
 0x167   :  { %2791 = vmatprep.subr.bf16.mxu0 %v4347_v16  ;;  %2832 = vmatprep.subr.bf16.mxu1 %v4350_v17  ;;  %v4387_v17 = vld [vmem:[#allocation5 + $0xe8] ss:$16 sps:$4 sm:$0xff]  }
 0x16a   :  { %2792 = vmatpush2.bf16.msra.mxu0 %v4345_v18  ;;  %2833 = vmatpush2.bf16.msra.mxu1 %v4348_v19 }
 0x16b   :  { %2793 = vmatprep.subr.bf16.mxu0 %v4353_v20  ;;  %2834 = vmatprep.subr.bf16.mxu1 %v4356_v21  ;;  %v4390_v20 = vld [vmem:[#allocation5 + $0x2e8] ss:$16 sps:$4 sm:$0xff]   ;;  %v4395_v21 = vld [vmem:[#allocation5 + $0xcc] ss:$16 sps:$4 sm:$0xff]  }
 0x16e   :  { %2794 = vmatpush2.bf16.msra.mxu0 %v4351_v22  ;;  %2835 = vmatpush2.bf16.msra.mxu1 %v4354_v53  ;;  %v4398_v22 = vld [vmem:[#allocation5 + $0x2cc] ss:$16 sps:$4 sm:$0xff]   ;;  %v4393_v53 = vld [vmem:[#allocation5 + $0xc8] ss:$16 sps:$4 sm:$0xff]  }
 0x16f   :  { %2795 = vmatprep.subr.bf16.mxu0 %v4359_v23  ;;  %2836 = vmatprep.subr.bf16.mxu1 %v4362_v13  ;;  %v4396_v23 = vld [vmem:[#allocation5 + $0x2c8] ss:$16 sps:$4 sm:$0xff]   ;;  %v4401_v13 = vld [vmem:[#allocation5 + $0xac] ss:$16 sps:$4 sm:$0xff]  }
 0x172   :  { %2796 = vmatpush2.bf16.msra.mxu0 %v4357_v24  ;;  %2837 = vmatpush2.bf16.msra.mxu1 %v4360_v25  ;;  %v4404_v24 = vld [vmem:[#allocation5 + $0x2ac] ss:$16 sps:$4 sm:$0xff]   ;;  %v4399_v25 = vld [vmem:[#allocation5 + $0xa8] ss:$16 sps:$4 sm:$0xff]  }
 0x173   :  { %2797 = vmatprep.subr.bf16.mxu0 %v4365_v26  ;;  %2838 = vmatprep.subr.bf16.mxu1 %v4368_v27  ;;  %v4402_v26 = vld [vmem:[#allocation5 + $0x2a8] ss:$16 sps:$4 sm:$0xff]   ;;  %v4407_v27 = vld [vmem:[#allocation5 + $0x8c] ss:$16 sps:$4 sm:$0xff]  }
 0x176   :  { %2798 = vmatpush2.bf16.msra.mxu0 %v4363_v28  ;;  %2839 = vmatpush2.bf16.msra.mxu1 %v4366_v29  ;;  %v4410_v28 = vld [vmem:[#allocation5 + $0x28c] ss:$16 sps:$4 sm:$0xff]   ;;  %v4405_v29 = vld [vmem:[#allocation5 + $0x88] ss:$16 sps:$4 sm:$0xff]  }
 0x177   :  { %2799 = vmatprep.subr.bf16.mxu0 %v4371_v30  ;;  %2840 = vmatprep.subr.bf16.mxu1 %v4374_v31  ;;  %v4413_v30 = vld [vmem:[#allocation5 + $0x6c] ss:$16 sps:$4 sm:$0xff]  }
 0x178   :  { %v4416_v31 = vld [vmem:[#allocation5 + $0x26c] ss:$16 sps:$4 sm:$0xff]  }
 0x17a   :  { %2800 = vmatpush2.bf16.msra.mxu0 %v4369_v36  ;;  %2841 = vmatpush2.bf16.msra.mxu1 %v4372_v40  ;;  %v4422_v36 = vld [vmem:[#allocation5 + $0x24c] ss:$16 sps:$4 sm:$0xff]   ;;  %v4420_v40 = vld [vmem:[#allocation5 + $0x248] ss:$16 sps:$4 sm:$0xff]  }
 0x17b   :  { %v1042_v47 = vpop.f32.mrf.mxu0  ;;  %2801 = vmatprep.subr.bf16.mxu0 %v4377_v41  ;;  %v1083_v52 = vpop.f32.mrf.mxu1  ;;  %2842 = vmatprep.subr.bf16.mxu1 %v4380_v43  ;;  %v4425_v41 = vld [vmem:[#allocation5 + $0x2c] ss:$16 sps:$4 sm:$0xff]   ;;  %v4426_v43 = vld [vmem:[#allocation5 + $0x228] ss:$16 sps:$4 sm:$0xff]  }
 0x17c   :  { %v1094_v51 = vadd.f32 %v1042_v47, %v113_v42  ;;  %v1096_v55 = vadd.f32 %v1083_v52, %v121_v44  ;;  %v4423_v42 = vld [vmem:[#allocation5 + $0x28] ss:$16 sps:$4 sm:$0xff]   ;;  %v4431_v44 = vld [vmem:[#allocation5 + $0xc] ss:$16 sps:$4 sm:$0xff]  }
 0x17d   :  { %v1044_v56 = vpop.f32.mrf.mxu0  ;;  %v1085_v59 = vpop.f32.mrf.mxu1  ;;  %v4432_v47 = vld [vmem:[#allocation5 + $0x208] ss:$16 sps:$4 sm:$0xff]   ;;  %v4443_v52 = vld [vmem:[#allocation5 + $0x1cc] ss:$16 sps:$4 sm:$0xff]  }
 0x17e   :  { %v1095_v58 = vadd.f32 %v1044_v56, %v117_v46  ;;  %2802 = vmatpush2.bf16.msra.mxu0 %v4375_v45  ;;  %v1121_v61 = vmax.f32 %v1094_v51, 0.0  ;;  %v1123_v62 = vmax.f32 %v1096_v55, 0.0  ;;  %v1097_v63 = vadd.f32 %v1085_v59, %v125_v49  ;;  %2843 = vmatpush2.bf16.msra.mxu1 %v4378_v48  ;;  %v4434_v45 = vld [vmem:[#allocation5 + $0x20c] ss:$16 sps:$4 sm:$0xff]   ;;  %v4429_v46 = vld [vmem:[#allocation5 + $0x8] ss:$16 sps:$4 sm:$0xff]  }
 0x17f   :  { %v1046_v0 = vpop.f32.mrf.mxu0  ;;  %2803 = vmatprep.subr.bf16.mxu0 %v4383_v50  ;;  %v1087_v3 = vpop.f32.mrf.mxu1  ;;  %2844 = vmatprep.subr.bf16.mxu1 %v4386_v54  ;;  %v4437_v48 = vld [vmem:[#allocation5 + $0x1ec] ss:$16 sps:$4 sm:$0xff]   ;;  %v4435_v50 = vld [vmem:[#allocation5 + $0x1e8] ss:$16 sps:$4 sm:$0xff]  }
 0x180   :  { %v1122_v11 = vmax.f32 %v1095_v58, 0.0  ;;  %v1124_v5 = vmax.f32 %v1097_v63, 0.0  ;;  %v4917_v7 = vpack.c.bf16 %v1123_v62, %v1123_v62  ;;  %v4921_v18 = vpack.c.bf16 %v1121_v61, %v1121_v61  ;;  %v4440_v49 = vld [vmem:[#allocation5 + $0x3ec] ss:$16 sps:$4 sm:$0xff]   ;;  %v4438_v51 = vld [vmem:[#allocation5 + $0x3e8] ss:$16 sps:$4 sm:$0xff]  }
 0x181   :  { %v1047_v6 = vpop.f32.mrf.mxu0  ;;  %v1088_v16 = vpop.f32.mrf.mxu1  ;;  %v4446_v54 = vld [vmem:[#allocation5 + $0x3cc] ss:$16 sps:$4 sm:$0xff]   ;;  %v4441_v55 = vld [vmem:[#allocation5 + $0x1c8] ss:$16 sps:$4 sm:$0xff]  }
 0x182   :  { %v4919_v8 = vpack.c.bf16 %v1122_v11, %v1122_v11  ;;  %2804 = vmatpush2.bf16.msra.mxu0 %v4381_v60  ;;  %v4923_v19 = vpack.c.bf16 %v1124_v5, %v1124_v5  ;;  %2845 = vmatpush2.bf16.msra.mxu1 %v4384_v1  ;;  %v4444_v56 = vld [vmem:[#allocation5 + $0x3c8] ss:$16 sps:$4 sm:$0xff]   ;;  %v4449_v58 = vld [vmem:[#allocation5 + $0x1ac] ss:$16 sps:$4 sm:$0xff]  }
 0x183   :  { %2855 = vmatprep.subr.bf16.mxu0 %v4389_v2  ;;  %2896 = vmatprep.subr.bf16.mxu1 %v4392_v4  ;;  %v4452_v59 = vld [vmem:[#allocation5 + $0x3ac] ss:$16 sps:$4 sm:$0xff]   ;;  %v4447_v60 = vld [vmem:[#allocation5 + $0x1a8] ss:$16 sps:$4 sm:$0xff]  }
 0x184   :  { %2805 = vmatprep.mubr.bf16.mxu0 %v4919_v8  ;;  %2846 = vmatprep.mubr.bf16.mxu1 %v4923_v19  ;;  %v4450_v61 = vld [vmem:[#allocation5 + $0x3a8] ss:$16 sps:$4 sm:$0xff]   ;;  %v4455_v62 = vld [vmem:[#allocation5 + $0x18c] ss:$16 sps:$4 sm:$0xff]  }
 0x185   :  { %2806 = vmatmul.mubr.bf16.vlgmr.msra.gmra.mxu0 %v4921_v18  ;;  %2847 = vmatmul.mubr.bf16.vlgmr.msra.gmra.mxu1 %v4917_v7  ;;  %v4458_v63 = vld [vmem:[#allocation5 + $0x38c] ss:$16 sps:$4 sm:$0xff]   ;;  %v4453_v0 = vld [vmem:[#allocation5 + $0x188] ss:$16 sps:$4 sm:$0xff]  }
 0x186   :  { %2856 = vmatpush1.bf16.msra.mxu0 %v4387_v17  ;;  %2897 = vmatpush1.bf16.msra.mxu1 %v4390_v20  ;;  %v4456_v1 = vld [vmem:[#allocation5 + $0x388] ss:$16 sps:$4 sm:$0xff]   ;;  %v4461_v2 = vld [vmem:[#allocation5 + $0x16c] ss:$16 sps:$4 sm:$0xff]  }
 0x187   :  { %2887 = vmatprep.mubr.bf16.mxu0 %v4899_v34  ;;  %2928 = vmatprep.mubr.bf16.mxu1 %v4903_v38  ;;  %v4408_v34 = vld [vmem:[#allocation5 + $0x288] ss:$16 sps:$4 sm:$0xff]   ;;  %v4464_v11 = vld [vmem:[#allocation5 + $0x36c] ss:$16 sps:$4 sm:$0xff]  }
 0x188   :  { %2857 = vmatprep.subr.bf16.mxu0 %v4395_v21  ;;  %2898 = vmatprep.subr.bf16.mxu1 %v4398_v22  ;;  %v4411_v38 = vld [vmem:[#allocation5 + $0x68] ss:$16 sps:$4 sm:$0xff]   ;;  %v4467_v5 = vld [vmem:[#allocation5 + $0x14c] ss:$16 sps:$4 sm:$0xff]  }
 0x189   :  { %v4459_v3 = vld [vmem:[#allocation5 + $0x168] ss:$16 sps:$4 sm:$0xff]   ;;  %v4470_v6 = vld [vmem:[#allocation5 + $0x34c] ss:$16 sps:$4 sm:$0xff]  }
 0x18a   :  { %2858 = vmatpush1.bf16.msra.mxu0 %v4393_v53  ;;  %2899 = vmatpush1.bf16.msra.mxu1 %v4396_v23  ;;  %v4462_v4 = vld [vmem:[#allocation5 + $0x368] ss:$16 sps:$4 sm:$0xff]   ;;  %v4473_v20 = vld [vmem:[#allocation5 + $0x12c] ss:$16 sps:$4 sm:$0xff]  }
 0x18b   :  { %2859 = vmatprep.subr.bf16.mxu0 %v4401_v13  ;;  %2900 = vmatprep.subr.bf16.mxu1 %v4404_v24  ;;  %v4465_v16 = vld [vmem:[#allocation5 + $0x148] ss:$16 sps:$4 sm:$0xff]   ;;  %v4476_v21 = vld [vmem:[#allocation5 + $0x32c] ss:$16 sps:$4 sm:$0xff]  }
 0x18c   :  { %v4468_v17 = vld [vmem:[#allocation5 + $0x348] ss:$16 sps:$4 sm:$0xff]   ;;  %v4479_v23 = vld [vmem:[#allocation5 + $0x10c] ss:$16 sps:$4 sm:$0xff]  }
 0x18d   :  { %v4471_v22 = vld [vmem:[#allocation5 + $0x128] ss:$16 sps:$4 sm:$0xff]   ;;  %v4482_v13 = vld [vmem:[#allocation5 + $0x30c] ss:$16 sps:$4 sm:$0xff]  }
 0x18e   :  { %2860 = vmatpush1.bf16.msra.mxu0 %v4399_v25  ;;  %2901 = vmatpush1.bf16.msra.mxu1 %v4402_v26  ;;  %v4474_v53 = vld [vmem:[#allocation5 + $0x328] ss:$16 sps:$4 sm:$0xff]   ;;  %v4485_v26 = vld [vmem:[#allocation5 + $0x4ec] ss:$16 sps:$4 sm:$0xff]  }
 0x18f   :  { %2861 = vmatprep.subr.bf16.mxu0 %v4407_v27  ;;  %2902 = vmatprep.subr.bf16.mxu1 %v4410_v28  ;;  %v4477_v24 = vld [vmem:[#allocation5 + $0x108] ss:$16 sps:$4 sm:$0xff]   ;;  %v4488_v27 = vld [vmem:[#allocation5 + $0x6ec] ss:$16 sps:$4 sm:$0xff]  }
 0x190   :  { %v4480_v25 = vld [vmem:[#allocation5 + $0x308] ss:$16 sps:$4 sm:$0xff]  }
 0x191   :  { %v4483_v28 = vld [vmem:[#allocation5 + $0x4e8] ss:$16 sps:$4 sm:$0xff]  }
 0x192   :  { %2862 = vmatpush1.bf16.msra.mxu0 %v4405_v29  ;;  %2903 = vmatpush1.bf16.msra.mxu1 %v4408_v34  ;;  %v4486_v29 = vld [vmem:[#allocation5 + $0x6e8] ss:$16 sps:$4 sm:$0xff]   ;;  %v4491_v34 = vld [vmem:[#allocation5 + $0x4cc] ss:$16 sps:$4 sm:$0xff]  }
 0x193   :  { %2863 = vmatprep.subr.bf16.mxu0 %v4413_v30  ;;  %2904 = vmatprep.subr.bf16.mxu1 %v4416_v31  ;;  %v4494_v30 = vld [vmem:[#allocation5 + $0x6cc] ss:$16 sps:$4 sm:$0xff]   ;;  %v4489_v31 = vld [vmem:[#allocation5 + $0x4c8] ss:$16 sps:$4 sm:$0xff]  }
 0x196   :  { %2864 = vmatpush1.bf16.msra.mxu0 %v4411_v38  ;;  %2905 = vmatpush1.bf16.msra.mxu1 %v4414_v32  ;;  %v4492_v38 = vld [vmem:[#allocation5 + $0x6c8] ss:$16 sps:$4 sm:$0xff]   ;;  %v4497_v32 = vld [vmem:[#allocation5 + $0x4ac] ss:$16 sps:$4 sm:$0xff]  }
 0x197   :  { %2865 = vmatprep.subr.bf16.mxu0 %v4419_v35  ;;  %2906 = vmatprep.subr.bf16.mxu1 %v4422_v36  ;;  %v4500_v35 = vld [vmem:[#allocation5 + $0x6ac] ss:$16 sps:$4 sm:$0xff]   ;;  %v4495_v36 = vld [vmem:[#allocation5 + $0x4a8] ss:$16 sps:$4 sm:$0xff]  }
 0x19a   :  { %2866 = vmatpush1.bf16.msra.mxu0 %v4417_v39  ;;  %2907 = vmatpush1.bf16.msra.mxu1 %v4420_v40  ;;  %v4503_v39 = vld [vmem:[#allocation5 + $0x48c] ss:$16 sps:$4 sm:$0xff]   ;;  %v4501_v40 = vld [vmem:[#allocation5 + $0x488] ss:$16 sps:$4 sm:$0xff]  }
 0x19b   :  { %2867 = vmatprep.subr.bf16.mxu0 %v4425_v41  ;;  %2908 = vmatprep.subr.bf16.mxu1 %v4428_v57  ;;  %v4509_v41 = vld [vmem:[#allocation5 + $0x46c] ss:$16 sps:$4 sm:$0xff]  }
 0x19c   :  { %v4512_v57 = vld [vmem:[#allocation5 + $0x66c] ss:$16 sps:$4 sm:$0xff]  }
 0x19e   :  { %2868 = vmatpush1.bf16.msra.mxu0 %v4423_v42  ;;  %2909 = vmatpush1.bf16.msra.mxu1 %v4426_v43  ;;  %v4510_v42 = vld [vmem:[#allocation5 + $0x668] ss:$16 sps:$4 sm:$0xff]   ;;  %v4515_v43 = vld [vmem:[#allocation5 + $0x44c] ss:$16 sps:$4 sm:$0xff]  }
 0x19f   :  { %2869 = vmatprep.subr.bf16.mxu0 %v4431_v44  ;;  %2910 = vmatprep.subr.bf16.mxu1 %v4434_v45  ;;  %v4518_v44 = vld [vmem:[#allocation5 + $0x64c] ss:$16 sps:$4 sm:$0xff]   ;;  %v4513_v45 = vld [vmem:[#allocation5 + $0x448] ss:$16 sps:$4 sm:$0xff]  }
 0x1a2   :  { %2870 = vmatpush1.bf16.msra.mxu0 %v4429_v46  ;;  %2911 = vmatpush1.bf16.msra.mxu1 %v4432_v47  ;;  %v4516_v46 = vld [vmem:[#allocation5 + $0x648] ss:$16 sps:$4 sm:$0xff]   ;;  %v4521_v47 = vld [vmem:[#allocation5 + $0x42c] ss:$16 sps:$4 sm:$0xff]  }
 0x1a3   :  { %2871 = vmatprep.subr.bf16.mxu0 %v4437_v48  ;;  %2912 = vmatprep.subr.bf16.mxu1 %v4440_v49  ;;  %v4524_v48 = vld [vmem:[#allocation5 + $0x62c] ss:$16 sps:$4 sm:$0xff]   ;;  %v4519_v49 = vld [vmem:[#allocation5 + $0x428] ss:$16 sps:$4 sm:$0xff]  }
 0x1a6   :  { %2872 = vmatpush2.bf16.msra.mxu0 %v4435_v50  ;;  %2913 = vmatpush2.bf16.msra.mxu1 %v4438_v51  ;;  %v4522_v50 = vld [vmem:[#allocation5 + $0x628] ss:$16 sps:$4 sm:$0xff]   ;;  %v4527_v51 = vld [vmem:[#allocation5 + $0x40c] ss:$16 sps:$4 sm:$0xff]  }
 0x1a7   :  { %2873 = vmatprep.subr.bf16.mxu0 %v4443_v52  ;;  %2914 = vmatprep.subr.bf16.mxu1 %v4446_v54  ;;  %v4530_v52 = vld [vmem:[#allocation5 + $0x60c] ss:$16 sps:$4 sm:$0xff]   ;;  %v4525_v54 = vld [vmem:[#allocation5 + $0x408] ss:$16 sps:$4 sm:$0xff]  }
 0x1aa   :  { %2874 = vmatpush2.bf16.msra.mxu0 %v4441_v55  ;;  %2915 = vmatpush2.bf16.msra.mxu1 %v4444_v56  ;;  %v4528_v55 = vld [vmem:[#allocation5 + $0x608] ss:$16 sps:$4 sm:$0xff]   ;;  %v4533_v56 = vld [vmem:[#allocation5 + $0x5ec] ss:$16 sps:$4 sm:$0xff]  }
 0x1ab   :  { %2875 = vmatprep.subr.bf16.mxu0 %v4449_v58  ;;  %2916 = vmatprep.subr.bf16.mxu1 %v4452_v59  ;;  %v4536_v58 = vld [vmem:[#allocation5 + $0x7ec] ss:$16 sps:$4 sm:$0xff]   ;;  %v4531_v59 = vld [vmem:[#allocation5 + $0x5e8] ss:$16 sps:$4 sm:$0xff]  }
 0x1ae   :  { %2876 = vmatpush2.bf16.msra.mxu0 %v4447_v60  ;;  %2917 = vmatpush2.bf16.msra.mxu1 %v4450_v61  ;;  %v4534_v60 = vld [vmem:[#allocation5 + $0x7e8] ss:$16 sps:$4 sm:$0xff]   ;;  %v4539_v61 = vld [vmem:[#allocation5 + $0x5cc] ss:$16 sps:$4 sm:$0xff]  }
 0x1af   :  { %2877 = vmatprep.subr.bf16.mxu0 %v4455_v62  ;;  %2918 = vmatprep.subr.bf16.mxu1 %v4458_v63  ;;  %v4542_v62 = vld [vmem:[#allocation5 + $0x7cc] ss:$16 sps:$4 sm:$0xff]   ;;  %v4537_v63 = vld [vmem:[#allocation5 + $0x5c8] ss:$16 sps:$4 sm:$0xff]  }
 0x1b2   :  { %2878 = vmatpush2.bf16.msra.mxu0 %v4453_v0  ;;  %2919 = vmatpush2.bf16.msra.mxu1 %v4456_v1  ;;  %v4540_v0 = vld [vmem:[#allocation5 + $0x7c8] ss:$16 sps:$4 sm:$0xff]   ;;  %v4545_v1 = vld [vmem:[#allocation5 + $0x5ac] ss:$16 sps:$4 sm:$0xff]  }
 0x1b3   :  { %2879 = vmatprep.subr.bf16.mxu0 %v4461_v2  ;;  %2920 = vmatprep.subr.bf16.mxu1 %v4464_v11  ;;  %v4548_v2 = vld [vmem:[#allocation5 + $0x7ac] ss:$16 sps:$4 sm:$0xff]   ;;  %v4543_v11 = vld [vmem:[#allocation5 + $0x5a8] ss:$16 sps:$4 sm:$0xff]  }
 0x1b6   :  { %2880 = vmatpush2.bf16.msra.mxu0 %v4459_v3  ;;  %2921 = vmatpush2.bf16.msra.mxu1 %v4462_v4  ;;  %v4546_v3 = vld [vmem:[#allocation5 + $0x7a8] ss:$16 sps:$4 sm:$0xff]   ;;  %v4551_v4 = vld [vmem:[#allocation5 + $0x58c] ss:$16 sps:$4 sm:$0xff]  }
 0x1b7   :  { %2881 = vmatprep.subr.bf16.mxu0 %v4467_v5  ;;  %2922 = vmatprep.subr.bf16.mxu1 %v4470_v6  ;;  %v4554_v5 = vld [vmem:[#allocation5 + $0x78c] ss:$16 sps:$4 sm:$0xff]   ;;  %v4549_v6 = vld [vmem:[#allocation5 + $0x588] ss:$16 sps:$4 sm:$0xff]  }
 0x1ba   :  { %2882 = vmatpush2.bf16.msra.mxu0 %v4465_v16  ;;  %2923 = vmatpush2.bf16.msra.mxu1 %v4468_v17  ;;  %v4552_v16 = vld [vmem:[#allocation5 + $0x788] ss:$16 sps:$4 sm:$0xff]   ;;  %v4557_v17 = vld [vmem:[#allocation5 + $0x56c] ss:$16 sps:$4 sm:$0xff]  }
 0x1bb   :  { %2883 = vmatprep.subr.bf16.mxu0 %v4473_v20  ;;  %2924 = vmatprep.subr.bf16.mxu1 %v4476_v21  ;;  %v4560_v20 = vld [vmem:[#allocation5 + $0x76c] ss:$16 sps:$4 sm:$0xff]   ;;  %v4555_v21 = vld [vmem:[#allocation5 + $0x568] ss:$16 sps:$4 sm:$0xff]  }
 0x1be   :  { %2884 = vmatpush2.bf16.msra.mxu0 %v4471_v22  ;;  %2925 = vmatpush2.bf16.msra.mxu1 %v4474_v53  ;;  %v4558_v22 = vld [vmem:[#allocation5 + $0x768] ss:$16 sps:$4 sm:$0xff]   ;;  %v4563_v53 = vld [vmem:[#allocation5 + $0x54c] ss:$16 sps:$4 sm:$0xff]  }
 0x1bf   :  { %2885 = vmatprep.subr.bf16.mxu0 %v4479_v23  ;;  %2926 = vmatprep.subr.bf16.mxu1 %v4482_v13  ;;  %v4566_v23 = vld [vmem:[#allocation5 + $0x74c] ss:$16 sps:$4 sm:$0xff]   ;;  %v4561_v13 = vld [vmem:[#allocation5 + $0x548] ss:$16 sps:$4 sm:$0xff]  }
 0x1c2   :  { %2886 = vmatpush2.bf16.msra.mxu0 %v4477_v24  ;;  %2927 = vmatpush2.bf16.msra.mxu1 %v4480_v25  ;;  %v4564_v24 = vld [vmem:[#allocation5 + $0x748] ss:$16 sps:$4 sm:$0xff]   ;;  %v4569_v25 = vld [vmem:[#allocation5 + $0x52c] ss:$16 sps:$4 sm:$0xff]  }
 0x1c3   :  { %2937 = vmatprep.subr.bf16.mxu0 %v4485_v26  ;;  %2978 = vmatprep.subr.bf16.mxu1 %v4488_v27  ;;  %v4572_v26 = vld [vmem:[#allocation5 + $0x72c] ss:$16 sps:$4 sm:$0xff]   ;;  %v4567_v27 = vld [vmem:[#allocation5 + $0x528] ss:$16 sps:$4 sm:$0xff]  }
 0x1c5   :  { %2888 = vmatmul.mubr.bf16.vlgmr.msra.gmra.mxu0 %v4901_v37  ;;  %2929 = vmatmul.mubr.bf16.vlgmr.msra.gmra.mxu1 %v4897_v33  ;;  %v4498_v37 = vld [vmem:[#allocation5 + $0x6a8] ss:$16 sps:$4 sm:$0xff]   ;;  %v4506_v33 = vld [vmem:[#allocation5 + $0x68c] ss:$16 sps:$4 sm:$0xff]  }
 0x1c6   :  { %2938 = vmatpush1.bf16.msra.mxu0 %v4483_v28  ;;  %2969 = vmatprep.mubr.bf16.mxu0 %v4919_v8  ;;  %v4504_v8 = vld [vmem:[#allocation5 + $0x688] ss:$16 sps:$4 sm:$0xff]  }
 0x1c7   :  { %2979 = vmatpush1.bf16.msra.mxu1 %v4486_v29  ;;  %3010 = vmatprep.mubr.bf16.mxu1 %v4923_v19  ;;  %v4507_v19 = vld [vmem:[#allocation5 + $0x468] ss:$16 sps:$4 sm:$0xff]   ;;  %v4575_v29 = vld [vmem:[#allocation5 + $0x50c] ss:$16 sps:$4 sm:$0xff]  }
 0x1c8   :  { %2939 = vmatprep.subr.bf16.mxu0 %v4491_v34  ;;  %2980 = vmatprep.subr.bf16.mxu1 %v4494_v30  ;;  %v4570_v28 = vld [vmem:[#allocation5 + $0x728] ss:$16 sps:$4 sm:$0xff]   ;;  %v4578_v34 = vld [vmem:[#allocation5 + $0x70c] ss:$16 sps:$4 sm:$0xff]  }
 0x1c9   :  { %v4573_v30 = vld [vmem:[#allocation5 + $0x508] ss:$16 sps:$4 sm:$0xff]  }
 0x1ca   :  { %2940 = vmatpush1.bf16.msra.mxu0 %v4489_v31  ;;  %v4576_v31 = vld [vmem:[#allocation5 + $0x708] ss:$16 sps:$4 sm:$0xff]  }
 0x1cb   :  { %2981 = vmatpush1.bf16.msra.mxu1 %v4492_v38  ;;  %2941 = vmatprep.subr.bf16.mxu0 %v4497_v32  ;;  %v4581_v38 = vld [vmem:[#allocation7 + $0x74] ss:$8 sps:$4 sm:$0xff]   ;;  %v4579_v32 = vld [vmem:[#allocation7 + $0x70] ss:$8 sps:$4 sm:$0xff]  }
 0x1cc   :  { %2982 = vmatprep.subr.bf16.mxu1 %v4500_v35  ;;  %v4584_v35 = vld [vmem:[#allocation7 + $0x64] ss:$8 sps:$4 sm:$0xff]  }
 0x1ce   :  { %2942 = vmatpush1.bf16.msra.mxu0 %v4495_v36 }
 0x1cf   :  { %2983 = vmatpush1.bf16.msra.mxu1 %v4498_v37  ;;  %2943 = vmatprep.subr.bf16.mxu0 %v4503_v39  ;;  %v4582_v39 = vld [vmem:[#allocation7 + $0x60] ss:$8 sps:$4 sm:$0xff]  }
 0x1d0   :  { %2984 = vmatprep.subr.bf16.mxu1 %v4506_v33 }
 0x1d2   :  { %2944 = vmatpush1.bf16.msra.mxu0 %v4501_v40  ;;  %v4587_v40 = vld [vmem:[#allocation7 + $0x54] ss:$8 sps:$4 sm:$0xff]  }
 0x1d3   :  { %2985 = vmatpush1.bf16.msra.mxu1 %v4504_v8  ;;  %2945 = vmatprep.subr.bf16.mxu0 %v4509_v41 }
 0x1d4   :  { %2986 = vmatprep.subr.bf16.mxu1 %v4512_v57 }
 0x1d6   :  { %2946 = vmatpush1.bf16.msra.mxu0 %v4507_v19  ;;  %v4585_v19 = vld [vmem:[#allocation7 + $0x50] ss:$8 sps:$4 sm:$0xff]  }
 0x1d7   :  { %2987 = vmatpush1.bf16.msra.mxu1 %v4510_v42  ;;  %2947 = vmatprep.subr.bf16.mxu0 %v4515_v43 }
 0x1d8   :  { %2988 = vmatprep.subr.bf16.mxu1 %v4518_v44  ;;  %v4627_v44 = vld [vmem:[#allocation7 + $0x170] ss:$8 sps:$4 sm:$0xff]  }
 0x1da   :  { %2948 = vmatpush1.bf16.msra.mxu0 %v4513_v45  ;;  %v4632_v45 = vld [vmem:[#allocation7 + $0x164] ss:$8 sps:$4 sm:$0xff]  }
 0x1db   :  { %2989 = vmatpush1.bf16.msra.mxu1 %v4516_v46  ;;  %2949 = vmatprep.subr.bf16.mxu0 %v4521_v47  ;;  %v4588_v46 = vld [vmem:[#allocation7 + $0x40] ss:$8 sps:$4 sm:$0xff]   ;;  %v4593_v47 = vld [vmem:[#allocation7 + $0x34] ss:$8 sps:$4 sm:$0xff]  }
 0x1dc   :  { %2990 = vmatprep.subr.bf16.mxu1 %v4524_v48  ;;  %v4630_v48 = vld [vmem:[#allocation7 + $0x160] ss:$8 sps:$4 sm:$0xff]  }
 0x1de   :  { %2950 = vmatpush1.bf16.msra.mxu0 %v4519_v49  ;;  %v4635_v49 = vld [vmem:[#allocation7 + $0x154] ss:$8 sps:$4 sm:$0xff]  }
 0x1df   :  { %2991 = vmatpush1.bf16.msra.mxu1 %v4522_v50  ;;  %2951 = vmatprep.subr.bf16.mxu0 %v4527_v51  ;;  %v4591_v50 = vld [vmem:[#allocation7 + $0x30] ss:$8 sps:$4 sm:$0xff]   ;;  %v4596_v51 = vld [vmem:[#allocation7 + $0x24] ss:$8 sps:$4 sm:$0xff]  }
 0x1e0   :  { %2992 = vmatprep.subr.bf16.mxu1 %v4530_v52  ;;  %v4633_v52 = vld [vmem:[#allocation7 + $0x150] ss:$8 sps:$4 sm:$0xff]  }
 0x1e2   :  { %2952 = vmatpush1.bf16.msra.mxu0 %v4525_v54  ;;  %v4638_v54 = vld [vmem:[#allocation7 + $0x144] ss:$8 sps:$4 sm:$0xff]  }
 0x1e3   :  { %2993 = vmatpush1.bf16.msra.mxu1 %v4528_v55  ;;  %2953 = vmatprep.subr.bf16.mxu0 %v4533_v56  ;;  %v4594_v55 = vld [vmem:[#allocation7 + $0x20] ss:$8 sps:$4 sm:$0xff]   ;;  %v4599_v56 = vld [vmem:[#allocation7 + $0x14] ss:$8 sps:$4 sm:$0xff]  }
 0x1e4   :  { %2994 = vmatprep.subr.bf16.mxu1 %v4536_v58  ;;  %v4636_v58 = vld [vmem:[#allocation7 + $0x140] ss:$8 sps:$4 sm:$0xff]  }
 0x1e6   :  { %2954 = vmatpush2.bf16.msra.mxu0 %v4531_v59  ;;  %v4641_v59 = vld [vmem:[#allocation7 + $0x134] ss:$8 sps:$4 sm:$0xff]  }
 0x1e7   :  { %2995 = vmatpush2.bf16.msra.mxu1 %v4534_v60  ;;  %2955 = vmatprep.subr.bf16.mxu0 %v4539_v61  ;;  %v4597_v60 = vld [vmem:[#allocation7 + $0x10] ss:$8 sps:$4 sm:$0xff]   ;;  %v4602_v61 = vld [vmem:[#allocation7 + $0x4] ss:$8 sps:$4 sm:$0xff]  }
 0x1e8   :  { %2996 = vmatprep.subr.bf16.mxu1 %v4542_v62  ;;  %v4639_v62 = vld [vmem:[#allocation7 + $0x130] ss:$8 sps:$4 sm:$0xff]  }
 0x1ea   :  { %2956 = vmatpush2.bf16.msra.mxu0 %v4537_v63  ;;  %v4644_v63 = vld [vmem:[#allocation7 + $0x124] ss:$8 sps:$4 sm:$0xff]  }
 0x1eb   :  { %2997 = vmatpush2.bf16.msra.mxu1 %v4540_v0  ;;  %2957 = vmatprep.subr.bf16.mxu0 %v4545_v1  ;;  %v4600_v0 = vld [vmem:[#allocation7] ss:$8 sps:$4 sm:$0xff]   ;;  %v4605_v1 = vld [vmem:[#allocation7 + $0xf4] ss:$8 sps:$4 sm:$0xff]  }
 0x1ec   :  { %2998 = vmatprep.subr.bf16.mxu1 %v4548_v2  ;;  %v4642_v2 = vld [vmem:[#allocation7 + $0x120] ss:$8 sps:$4 sm:$0xff]  }
 0x1ee   :  { %2958 = vmatpush2.bf16.msra.mxu0 %v4543_v11  ;;  %v4647_v11 = vld [vmem:[#allocation7 + $0x114] ss:$8 sps:$4 sm:$0xff]  }
 0x1ef   :  { %2999 = vmatpush2.bf16.msra.mxu1 %v4546_v3  ;;  %2959 = vmatprep.subr.bf16.mxu0 %v4551_v4  ;;  %v4603_v3 = vld [vmem:[#allocation7 + $0xf0] ss:$8 sps:$4 sm:$0xff]   ;;  %v4608_v4 = vld [vmem:[#allocation7 + $0xe4] ss:$8 sps:$4 sm:$0xff]  }
 0x1f0   :  { %3000 = vmatprep.subr.bf16.mxu1 %v4554_v5  ;;  %v4645_v5 = vld [vmem:[#allocation7 + $0x110] ss:$8 sps:$4 sm:$0xff]  }
 0x1f2   :  { %2960 = vmatpush2.bf16.msra.mxu0 %v4549_v6  ;;  %v4650_v6 = vld [vmem:[#allocation7 + $0x104] ss:$8 sps:$4 sm:$0xff]  }
 0x1f3   :  { %3001 = vmatpush2.bf16.msra.mxu1 %v4552_v16  ;;  %2961 = vmatprep.subr.bf16.mxu0 %v4557_v17  ;;  %v4606_v16 = vld [vmem:[#allocation7 + $0xe0] ss:$8 sps:$4 sm:$0xff]   ;;  %v4611_v17 = vld [vmem:[#allocation7 + $0xd4] ss:$8 sps:$4 sm:$0xff]  }
 0x1f4   :  { %3002 = vmatprep.subr.bf16.mxu1 %v4560_v20  ;;  %v4648_v20 = vld [vmem:[#allocation7 + $0x100] ss:$8 sps:$4 sm:$0xff]  }
 0x1f6   :  { %2962 = vmatpush2.bf16.msra.mxu0 %v4555_v21  ;;  %v4653_v21 = vld [vmem:[#allocation7 + $0x1f4] ss:$8 sps:$4 sm:$0xff]  }
 0x1f7   :  { %3003 = vmatpush2.bf16.msra.mxu1 %v4558_v22  ;;  %2963 = vmatprep.subr.bf16.mxu0 %v4563_v53  ;;  %v4609_v22 = vld [vmem:[#allocation7 + $0xd0] ss:$8 sps:$4 sm:$0xff]   ;;  %v4614_v53 = vld [vmem:[#allocation7 + $0xc4] ss:$8 sps:$4 sm:$0xff]  }
 0x1f8   :  { %3004 = vmatprep.subr.bf16.mxu1 %v4566_v23  ;;  %v4651_v23 = vld [vmem:[#allocation7 + $0x1f0] ss:$8 sps:$4 sm:$0xff]  }
 0x1fa   :  { %2964 = vmatpush2.bf16.msra.mxu0 %v4561_v13  ;;  %v4656_v13 = vld [vmem:[#allocation7 + $0x1e4] ss:$8 sps:$4 sm:$0xff]  }
 0x1fb   :  { %3005 = vmatpush2.bf16.msra.mxu1 %v4564_v24  ;;  %2965 = vmatprep.subr.bf16.mxu0 %v4569_v25  ;;  %v4612_v24 = vld [vmem:[#allocation7 + $0xc0] ss:$8 sps:$4 sm:$0xff]   ;;  %v4617_v25 = vld [vmem:[#allocation7 + $0xb4] ss:$8 sps:$4 sm:$0xff]  }
 0x1fc   :  { %3006 = vmatprep.subr.bf16.mxu1 %v4572_v26  ;;  %v4654_v26 = vld [vmem:[#allocation7 + $0x1e0] ss:$8 sps:$4 sm:$0xff]  }
 0x1fe   :  { %2966 = vmatpush2.bf16.msra.mxu0 %v4567_v27  ;;  %v4659_v27 = vld [vmem:[#allocation7 + $0x1d4] ss:$8 sps:$4 sm:$0xff]  }
 0x1ff   :  { %3007 = vmatpush2.bf16.msra.mxu1 %v4570_v28  ;;  %2967 = vmatprep.subr.bf16.mxu0 %v4575_v29  ;;  %v4615_v28 = vld [vmem:[#allocation7 + $0xb0] ss:$8 sps:$4 sm:$0xff]   ;;  %v4620_v29 = vld [vmem:[#allocation7 + $0xa4] ss:$8 sps:$4 sm:$0xff]  }
 0x200   :  { %3008 = vmatprep.subr.bf16.mxu1 %v4578_v34  ;;  %v4657_v34 = vld [vmem:[#allocation7 + $0x1d0] ss:$8 sps:$4 sm:$0xff]  }
 0x202   :  { %2968 = vmatpush2.bf16.msra.mxu0 %v4573_v30  ;;  %v4662_v30 = vld [vmem:[#allocation7 + $0x1c4] ss:$8 sps:$4 sm:$0xff]  }
 0x203   :  { %3009 = vmatpush2.bf16.msra.mxu1 %v4576_v31  ;;  %3423 = vmatprep.subr.bf16.mxu0 %v4581_v38  ;;  %v4618_v31 = vld [vmem:[#allocation7 + $0xa0] ss:$8 sps:$4 sm:$0xff]   ;;  %v4623_v38 = vld [vmem:[#allocation7 + $0x94] ss:$8 sps:$4 sm:$0xff]  }
 0x205   :  { %2970 = vmatmul.mubr.bf16.vlgmr.msra.gmra.mxu0 %v4921_v18  ;;  %v4936_v36 = vpop.f32.mrf.mxu0  ;;  %v4939_v37 = vpop.f32.mrf.mxu1  ;;  %v4590_v18 = vld [vmem:[#allocation7 + $0x44] ss:$8 sps:$4 sm:$0xff]  }
 0x206   :  { %3011 = vmatmul.mubr.bf16.vlgmr.msra.gmra.mxu1 %v4917_v7  ;;  %3424 = vmatpush1.bf16.msra.mxu0 %v4579_v32  ;;  %v4629_v7 = vld [vmem:[#allocation7 + $0x174] ss:$8 sps:$4 sm:$0xff]   ;;  %v4660_v32 = vld [vmem:[#allocation7 + $0x1c0] ss:$8 sps:$4 sm:$0xff]  }
 0x207   :  { %v4941_v33 = vpop.f32.mrf.mxu0  ;;  %3425 = vmatprep.subr.bf16.mxu0 %v4584_v35  ;;  %v4943_v8 = vpop.f32.mrf.mxu1  ;;  %3464 = vmatprep.subr.bf16.mxu1 %v4629_v7  ;;  %v4665_v35 = vld [vmem:[#allocation7 + $0x1b4] ss:$8 sps:$4 sm:$0xff]  }
 0x208   :  { %3465 = vmatpush1.bf16.msra.mxu1 %v4627_v44 }
 0x209   :  { %v2729_v41 = vpop.f32.mrf.mxu0  ;;  %v2770_v57 = vpop.f32.mrf.mxu1  ;;  %3466 = vmatprep.subr.bf16.mxu1 %v4632_v45 }
 0x20a   :  { %3426 = vmatpush1.bf16.msra.mxu0 %v4582_v39  ;;  %v4948_v39 = vld [vmem:[%s4979_s4] sm:$0xf]  ;;  %v4626_v41 = vld [vmem:[#allocation7 + $0x84] ss:$8 sps:$4 sm:$0xff]   ;;  %v4663_v57 = vld [vmem:[#allocation7 + $0x1b0] ss:$8 sps:$4 sm:$0xff]  }
 0x20b   :  { %v2730_v42 = vpop.f32.mrf.mxu0  ;;  %3427 = vmatprep.subr.bf16.mxu0 %v4587_v40  ;;  %v2771_v43 = vpop.f32.mrf.mxu1  ;;  %v4621_v40 = vld [vmem:[#allocation7 + $0x90] ss:$8 sps:$4 sm:$0xff]  }
 0x20c   :  { %3467 = vmatpush1.bf16.msra.mxu1 %v4630_v48  ;;  %v1398_v42 = vrot.slane %v4948_v39, %v4884_v14 }
 0x20d   :  { %3468 = vmatprep.subr.bf16.mxu1 %v4635_v49 }
 0x20e   :  { %3428 = vmatpush1.bf16.msra.mxu0 %v4585_v19  ;;  %v1394_v19 = vrot.slane %v4948_v39, %v4875_v10  ;;  %v2728_v44 = vadd.f32 %v4941_v33, %v1398_v42 }
 0x20f   :  { %3429 = vmatprep.subr.bf16.mxu0 %v4590_v18  ;;  %v4624_v18 = vld [vmem:[#allocation7 + $0x80] ss:$8 sps:$4 sm:$0xff]  }
 0x210   :  { %3469 = vmatpush1.bf16.msra.mxu1 %v4633_v52  ;;  %v2726_v43 = vadd.f32 %v4936_v36, %v1394_v19  ;;  %v4671_v36 = vld [vmem:[#allocation7 + $0x194] ss:$8 sps:$4 sm:$0xff]  }
 0x211   :  { %3470 = vmatprep.subr.bf16.mxu1 %v4638_v54 }
 0x212   :  { %3430 = vmatpush1.bf16.msra.mxu0 %v4588_v46  ;;  %v2767_v7 = vadd.f32 %v4939_v37, %v2726_v43  ;;  %v4668_v46 = vld [vmem:[#allocation7 + $0x1a4] ss:$8 sps:$4 sm:$0xff]  }
 0x213   :  { %3431 = vmatprep.subr.bf16.mxu0 %v4593_v47  ;;  %v2769_v47 = vadd.f32 %v4943_v8, %v2728_v44  ;;  %v4674_v8 = vld [vmem:[#allocation7 + $0x184] ss:$8 sps:$4 sm:$0xff]  }
 0x214   :  { %3471 = vmatpush1.bf16.msra.mxu1 %v4636_v58 }
 0x215   :  { %3472 = vmatprep.subr.bf16.mxu1 %v4641_v59  ;;  %v4669_v59 = vld [vmem:[#allocation7 + $0x190] ss:$8 sps:$4 sm:$0xff]  }
 0x216   :  { %3432 = vmatpush1.bf16.msra.mxu0 %v4591_v50  ;;  %v4666_v50 = vld [vmem:[#allocation7 + $0x1a0] ss:$8 sps:$4 sm:$0xff]  }
 0x217   :  { %3433 = vmatprep.subr.bf16.mxu0 %v4596_v51 }
 0x218   :  { %3473 = vmatpush1.bf16.msra.mxu1 %v4639_v62 }
 0x219   :  { %3474 = vmatprep.subr.bf16.mxu1 %v4644_v63 }
 0x21a   :  { %3434 = vmatpush1.bf16.msra.mxu0 %v4594_v55 }
 0x21b   :  { %3435 = vmatprep.subr.bf16.mxu0 %v4599_v56 }
 0x21c   :  { %3475 = vmatpush1.bf16.msra.mxu1 %v4642_v2 }
 0x21d   :  { %3476 = vmatprep.subr.bf16.mxu1 %v4647_v11 }
 0x21e   :  { %3436 = vmatpush1.bf16.msra.mxu0 %v4597_v60 }
 0x21f   :  { %3437 = vmatprep.subr.bf16.mxu0 %v4602_v61 }
 0x220   :  { %3477 = vmatpush1.bf16.msra.mxu1 %v4645_v5 }
 0x221   :  { %3478 = vmatprep.subr.bf16.mxu1 %v4650_v6 }
 0x222   :  { %3438 = vmatpush1.bf16.msra.mxu0 %v4600_v0  ;;  %v4672_v0 = vld [vmem:[#allocation7 + $0x180] ss:$8 sps:$4 sm:$0xff]  }
 0x223   :  { %3439 = vmatprep.subr.bf16.mxu0 %v4605_v1 }
 0x224   :  { %3479 = vmatpush1.bf16.msra.mxu1 %v4648_v20  ;;  %v4675_v20 = vld [vmem:[#allocation8 + $0x78] sm:$0xff]  }
 0x225   :  { %3480 = vmatprep.subr.bf16.mxu1 %v4653_v21  ;;  %v4676_v21 = vld [vmem:[#allocation8 + $0x38] sm:$0xff]  }
 0x226   :  { %3440 = vmatpush2.bf16.msra.mxu0 %v4603_v3 }
 0x227   :  { %3441 = vmatprep.subr.bf16.mxu0 %v4608_v4 }
 0x228   :  { %3481 = vmatpush2.bf16.msra.mxu1 %v4651_v23  ;;  %v4679_v23 = vld [vmem:[#allocation8 + $0x68] sm:$0xff]  }
 0x229   :  { %3482 = vmatprep.subr.bf16.mxu1 %v4656_v13  ;;  %v4680_v13 = vld [vmem:[#allocation8 + $0x28] sm:$0xff]  }
 0x22a   :  { %3442 = vmatpush2.bf16.msra.mxu0 %v4606_v16 }
 0x22b   :  { %3443 = vmatprep.subr.bf16.mxu0 %v4611_v17 }
 0x22c   :  { %3483 = vmatpush2.bf16.msra.mxu1 %v4654_v26  ;;  %v4683_v26 = vld [vmem:[#allocation8 + $0x58] sm:$0xff]  }
 0x22d   :  { %3484 = vmatprep.subr.bf16.mxu1 %v4659_v27  ;;  %v4684_v27 = vld [vmem:[#allocation8 + $0x18] sm:$0xff]  }
 0x22e   :  { %3444 = vmatpush2.bf16.msra.mxu0 %v4609_v22  ;;  %v4677_v22 = vld [vmem:[#allocation8 + $0x70] sm:$0xff]  }
 0x22f   :  { %3445 = vmatprep.subr.bf16.mxu0 %v4614_v53  ;;  %v4678_v53 = vld [vmem:[#allocation8 + $0x30] sm:$0xff]  }
 0x230   :  { %3485 = vmatpush2.bf16.msra.mxu1 %v4657_v34  ;;  %v1402_v34 = vrot.slane %v4948_v39, %v104_v12 }
 0x231   :  { %3486 = vmatprep.subr.bf16.mxu1 %v4662_v30  ;;  %v1406_v30 = vrot.slane %v4948_v39, %v108_v15 }
 0x232   :  { %3446 = vmatpush2.bf16.msra.mxu0 %v4612_v24  ;;  %v4681_v24 = vld [vmem:[#allocation8 + $0x60] sm:$0xff]  }
 0x233   :  { %3447 = vmatprep.subr.bf16.mxu0 %v4617_v25  ;;  %v4682_v25 = vld [vmem:[#allocation8 + $0x20] sm:$0xff]  }
 0x234   :  { %3487 = vmatpush2.bf16.msra.mxu1 %v4660_v32 }
 0x235   :  { %3488 = vmatprep.subr.bf16.mxu1 %v4665_v35 }
 0x236   :  { %3448 = vmatpush2.bf16.msra.mxu0 %v4615_v28  ;;  %v4685_v28 = vld [vmem:[#allocation8 + $0x50] sm:$0xff]  }
 0x237   :  { %3449 = vmatprep.subr.bf16.mxu0 %v4620_v29  ;;  %v4686_v29 = vld [vmem:[#allocation8 + $0x10] sm:$0xff]  }
 0x238   :  { %3489 = vmatpush2.bf16.msra.mxu1 %v4663_v57 }
 0x239   :  { %3490 = vmatprep.subr.bf16.mxu1 %v4668_v46 }
 0x23a   :  { %3450 = vmatpush2.bf16.msra.mxu0 %v4618_v31 }
 0x23b   :  { %3451 = vmatprep.subr.bf16.mxu0 %v4623_v38 }
 0x23c   :  { %3491 = vmatpush2.bf16.msra.mxu1 %v4666_v50  ;;  %v4687_v50 = vld [vmem:[#allocation8 + $0x48] sm:$0xff]  }
 0x23d   :  { %3492 = vmatprep.subr.bf16.mxu1 %v4671_v36  ;;  %v3091_v36 = vld [vmem:[%s4981_s6] sm:$0x3] }
 0x23e   :  { %3452 = vmatpush2.bf16.msra.mxu0 %v4621_v40 }
 0x23f   :  { %3453 = vmatprep.subr.bf16.mxu0 %v4626_v41 }
 0x240   :  { %3493 = vmatpush2.bf16.msra.mxu1 %v4669_v59 }
 0x241   :  { %3494 = vmatprep.subr.bf16.mxu1 %v4674_v8 }
 0x242   :  { %3454 = vmatpush2.bf16.msra.mxu0 %v4624_v18 }
 0x243   :  { %4159 = vmatprep.subr.bf16.mxu0 %v4675_v20 }
 0x244   :  { %3495 = vmatpush2.bf16.msra.mxu1 %v4672_v0 }
 0x245   :  { %v2807_v45 = vpop.f32.mrf.mxu0  ;;  %v2848_v49 = vpop.f32.mrf.mxu1 }
 0x246   :  { %v2808_v48 = vadd.f32 %v2807_v45, %v2767_v7 }
 0x247   :  { %v2809_v51 = vpop.f32.mrf.mxu0  ;;  %v2850_v55 = vpop.f32.mrf.mxu1 }
 0x248   :  { %v2849_v52 = vadd.f32 %v2848_v49, %v2808_v48  ;;  %v2810_v54 = vadd.f32 %v2809_v51, %v2769_v47  ;;  %v4688_v51 = vld [vmem:[#allocation8 + $0x8] sm:$0xff]  }
 0x249   :  { %v2811_v56 = vpop.f32.mrf.mxu0  ;;  %v2852_v33 = vpop.f32.mrf.mxu1 }
 0x24a   :  { %v2851_v58 = vadd.f32 %v2850_v55, %v2810_v54  ;;  %v3019_v60 = vmax.f32 %v2849_v52, 0.0  ;;  %v4689_v55 = vld [vmem:[#allocation8 + $0x40] sm:$0xff]   ;;  %v3100_v33 = vrot.slane %v3091_v36, %v4884_v14 }
 0x24b   :  { %v2812_v37 = vpop.f32.mrf.mxu0  ;;  %v2853_v62 = vpop.f32.mrf.mxu1  ;;  %v4690_v56 = vld [vmem:[#allocation8] sm:$0xff]  }
 0x24c   :  { %v3020_v61 = vmax.f32 %v2851_v58, 0.0  ;;  %v3023_v1 = vpack.c.bf16 %v3019_v60, %v3019_v60  ;;  %v3096_v58 = vrot.slane %v3091_v36, %v4875_v10  ;;  %v4142_v10 = vld [vmem:[%s4983_s8] ss:$0 sm:$0xff] }
 0x24e   :  { %v3024_v63 = vpack.c.bf16 %v3020_v61, %v3020_v61 }
 0x250   :  { %3455 = vmatprep.mubr.bf16.mxu0 %v3024_v63 }
 0x251   :  { %3456 = vmatmul.mubr.bf16.vlgmr.msra.gmra.mxu0 %v3023_v1 }
 0x252   :  { %4160 = vmatpush3.bf16.msra.mxu0 %v4676_v21 }
 0x253   :  { %4161 = vmatprep.subr.bf16.mxu0 %v4677_v22 }
 0x256   :  { %4162 = vmatpush3.bf16.msra.mxu0 %v4678_v53 }
 0x257   :  { %4163 = vmatprep.subr.bf16.mxu0 %v4679_v23 }
 0x25a   :  { %4164 = vmatpush3.bf16.msra.mxu0 %v4680_v13 }
 0x25b   :  { %4165 = vmatprep.subr.bf16.mxu0 %v4681_v24 }
 0x25e   :  { %4166 = vmatpush3.bf16.msra.mxu0 %v4682_v25 }
 0x25f   :  { %4167 = vmatprep.subr.bf16.mxu0 %v4683_v26 }
 0x262   :  { %4168 = vmatpush3.bf16.msra.mxu0 %v4684_v27 }
 0x263   :  { %4169 = vmatprep.subr.bf16.mxu0 %v4685_v28 }
 0x266   :  { %4170 = vmatpush3.bf16.msra.mxu0 %v4686_v29 }
 0x267   :  { %4171 = vmatprep.subr.bf16.mxu0 %v4687_v50 }
 0x26a   :  { %4172 = vmatpush3.bf16.msra.mxu0 %v4688_v51 }
 0x26b   :  { %4173 = vmatprep.subr.bf16.mxu0 %v4689_v55 }
 0x26e   :  { %4174 = vmatpush3.bf16.msra.mxu0 %v4690_v56 }
 0x285   :  { %v2889_v2 = vpop.f32.mrf.mxu0  ;;  %v2930_v11 = vpop.f32.mrf.mxu1 }
 0x286   :  { %v2890_v31 = vadd.f32 %v2889_v2, %v1402_v34 }
 0x287   :  { %v2891_v3 = vpop.f32.mrf.mxu0  ;;  %v2932_v4 = vpop.f32.mrf.mxu1 }
 0x288   :  { %v2892_v38 = vadd.f32 %v2891_v3, %v1406_v30  ;;  %v2931_v32 = vadd.f32 %v2930_v11, %v2890_v31 }
 0x289   :  { %v2893_v5 = vpop.f32.mrf.mxu0  ;;  %v2934_v6 = vpop.f32.mrf.mxu1 }
 0x28a   :  { %v2933_v40 = vadd.f32 %v2932_v4, %v2892_v38 }
 0x28b   :  { %v2894_v16 = vpop.f32.mrf.mxu0  ;;  %v2935_v17 = vpop.f32.mrf.mxu1 }
 0x2c5   :  { %v2971_v35 = vpop.f32.mrf.mxu0 }
 0x2c6   :  { %v2972_v41 = vadd.f32 %v2971_v35, %v2931_v32  ;;  %v3012_v57 = vpop.f32.mrf.mxu1 }
 0x2c7   :  { %v2973_v19 = vpop.f32.mrf.mxu0 }
 0x2c8   :  { %v3013_v42 = vadd.f32 %v3012_v57, %v2972_v41  ;;  %v2974_v18 = vadd.f32 %v2973_v19, %v2933_v40  ;;  %v3014_v43 = vpop.f32.mrf.mxu1 }
 0x2c9   :  { %v2975_v44 = vpop.f32.mrf.mxu0 }
 0x2ca   :  { %v3015_v7 = vadd.f32 %v3014_v43, %v2974_v18  ;;  %v3016_v45 = vpop.f32.mrf.mxu1  ;;  %v3021_v46 = vmax.f32 %v3013_v42, 0.0 }
 0x2cb   :  { %v2976_v12 = vpop.f32.mrf.mxu0 }
 0x2cc   :  { %v3022_v47 = vmax.f32 %v3015_v7, 0.0  ;;  %v3017_v9 = vpop.f32.mrf.mxu1  ;;  %v3025_v15 = vpack.c.bf16 %v3021_v46, %v3021_v46 }
 0x2ce   :  { %v3026_v48 = vpack.c.bf16 %v3022_v47, %v3022_v47 }
 0x2d0   :  { %3496 = vmatprep.mubr.bf16.mxu1 %v3026_v48 }
 0x2d1   :  { %3497 = vmatmul.mubr.bf16.vlgmr.msra.gmra.mxu1 %v3025_v15 }
 0x311   :  { %v3457_v39 = vpop.f32.mrf.mxu0 }
 0x312   :  { %v3458_v59 = vadd.f32 %v3457_v39, %v3096_v58 }
 0x313   :  { %v3459_v49 = vpop.f32.mrf.mxu0 }
 0x314   :  { %v3460_v37 = vadd.f32 %v3459_v49, %v3100_v33 }
 0x315   :  { %v3461_v52 = vpop.f32.mrf.mxu0 }
 0x317   :  { %v3462_v54 = vpop.f32.mrf.mxu0 }
 0x391   :  { %v3498_v60 = vpop.f32.mrf.mxu1 }
 0x392   :  { %v3499_v61 = vadd.f32 %v3498_v60, %v3458_v59 }
 0x393   :  { %v3500_v62 = vpop.f32.mrf.mxu1 }
 0x394   :  { %v3501_v8 = vadd.f32 %v3500_v62, %v3460_v37  ;;  %v3505_v63 = vmax.f32 %v3499_v61, 0.0 }
 0x395   :  { %v3502_v0 = vpop.f32.mrf.mxu1 }
 0x396   :  { %v3506_v1 = vmax.f32 %v3501_v8, 0.0  ;;  %v3507_v3 = vpack.c.bf16 %v3505_v63, %v3505_v63 }
 0x397   :  { %v3503_v2 = vpop.f32.mrf.mxu1 }
 0x398   :  { %v3508_v11 = vpack.c.bf16 %v3506_v1, %v3506_v1 }
 0x39a   :  { %3676 = vmatprep.mubr.bf16.mxu0 %v3508_v11 }
 0x39b   :  { %3677 = vmatmul.mubr.bf16.vlgmr.msra.gmra.mxu0 %v3507_v3 }
 0x45b   :  { %v4175_v4 = vpop.f32.mrf.mxu0 }
 0x45d   :  { %v4176_v14 = vpop.f32.mrf.mxu0 }
 0x45e   :  { %v4177_v5 = vadd.f32 %v4176_v14, %v4175_v4 }
 0x45f   :  { %v4178_v6 = vpop.f32.mrf.mxu0 }
 0x460   :  { %v3679_v16 = vadd.f32 %v4177_v5, %v4142_v10 }
 0x461   :  { %v4179_v17 = vpop.f32.mrf.mxu0 }
 0x462   :  { %3684 = vst [vmem:[%s4984_s9] sm:$0xff] %v3679_v16 }
 0x463   :  { %3689 = vsyncpa [#allocation4], 1 }
 0x464   :  { %3690 = vsyncpa [#allocation6], 1 }
 0x465   :  { %3691 = vsyncpa [#allocation9], 1 }

</bundles_post_ra>
